<compile_context>
chip_gen: v5e
topology: v5e:2x2
jax: 0.10.0
libtpu: 0.0.40
codegen_flags: <defaults>
</compile_context>

<pallas_src>
import functools

import jax
import jax.numpy as jnp
from jax.experimental import pallas as pl
from jax.experimental.pallas import tpu as pltpu

NEG_SLOPE = 0.01  # torch.nn.LeakyReLU default
LANE = 128
SUBLANE = 8


def _leaky(v):
    return jnp.where(v >= 0, v, NEG_SLOPE * v)


def seq2seq_kernel(
    # inputs
    sig_ref, last_ref,
    # packed [1, *] parameter slab (biases + GRU input weights, lane-concat)
    bias_ref,
    # packed 2-D weight slab (row-stacked, 128-lane padded)
    wslab_ref,
    # output
    out_ref,
    *, decoder_len, hidden_dim, n_pad, bias_segs, w_segs):
    f32 = jnp.float32
    H = hidden_dim
    HH = 2 * H  # r|z gate width

    def bias(name):
        off, size = bias_segs[name]          # static, 128-lane-aligned offsets
        return bias_ref[:, off:off + size]

    def weight(name):
        off, rows, cols = w_segs[name]       # static, 8-row-aligned offsets
        return wslab_ref[off:off + rows, :cols]

    # ---------------- MLP encoder (single-use weights loaded at point of use)
    x = sig_ref[...]                                                   # [N, D_in]
    y = _leaky(jnp.dot(x, weight("w1"), preferred_element_type=f32) + bias("b1"))
    y = _leaky(jnp.dot(y, weight("w2"), preferred_element_type=f32) + bias("b2"))
    h = jnp.dot(y, weight("wl"), preferred_element_type=f32) + bias("bl")   # [N, H]

    # -------- loop-invariant loads + one-time broadcasts for the decode loop
    whh = weight("whh")                       # [H, 3H]  fused r|z|n hidden weights
    wd1 = weight("wd1")                       # [H, H/2]
    wd2 = weight("wd2")                       # [H/2, H/4]
    w_fold = weight("w_fold")                 # [H/4, 3H]  wd3 folded into wih
    b_fold_b = jnp.broadcast_to(bias("b_fold"), (n_pad, 3 * H))
    bhh_n_b = jnp.broadcast_to(bias("bhh_n"), (n_pad, H))
    bd1_b = jnp.broadcast_to(bias("bd1"), (n_pad, wd1.shape[1]))
    bd2_b = jnp.broadcast_to(bias("bd2"), (n_pad, wd2.shape[1]))

    # step-0 input gates: gi = last*wih + (bih + bhh_rz)   (r/z biases pre-added)
    gi = last_ref[...] * bias("wih") + bias("gi0_bias")               # [N, 3H]

    # -------- GRU decoder loop (static unroll; decoder_len is small) --------
    yo2_steps = []
    for t in range(decoder_len):
        gh = jnp.dot(h, whh, preferred_element_type=f32)               # [N, 3H] (bias-free)
        rz = jax.nn.sigmoid(gi[:, :HH] + gh[:, :HH])                   # [N, 2H]
        r = rz[:, :H]
        z = rz[:, H:]
        n = jnp.tanh(gi[:, HH:] + r * (gh[:, HH:] + bhh_n_b))
        h = (1.0 - z) * n + z * h                                      # [N, H]

        yo1 = _leaky(jnp.dot(h, wd1, preferred_element_type=f32) + bd1_b)
        yo2 = _leaky(jnp.dot(yo1, wd2, preferred_element_type=f32) + bd2_b)
        yo2_steps.append(yo2)

        if t + 1 < decoder_len:
            # next step's input gates directly from yo2 (wd3 folded in)
            gi = jnp.dot(yo2, w_fold, preferred_element_type=f32) + b_fold_b

    # -------- batched final projection for all steps, lane-dense store ------
    y2 = jnp.concatenate(yo2_steps, axis=1)                            # [N, L*H/4]
    out_ref[...] = (jnp.dot(y2, weight("wd3_big"), preferred_element_type=f32)
                    + bias("bd3_row"))


def init_params(key, encoder_len, hidden_dim):
    """Deterministic parameter init mimicking PyTorch default uniform init.

    GRU parameters are stored fused along the gate axis in PyTorch order
    (r | z | n): wih [1, 3H], whh [H, 3H], bih [1, 3H], bhh [1, 3H].
    """
    d_in = encoder_len + 2 * (encoder_len // 2 + 1)
    H = hidden_dim

    def linear(key, fan_in, fan_out):
        kw, kb = jax.random.split(key)
        bound = 1.0 / jnp.sqrt(fan_in)
        w = jax.random.uniform(kw, (fan_in, fan_out), jnp.float32, -bound, bound)
        b = jax.random.uniform(kb, (1, fan_out), jnp.float32, -bound, bound)
        return w, b

    keys = jax.random.split(key, 7)
    p = {}
    # MLPEncoder
    p["w1"], p["b1"] = linear(keys[0], d_in, 100)
    p["w2"], p["b2"] = linear(keys[1], 100, d_in)
    p["wl"], p["bl"] = linear(keys[2], d_in, H)
    # GRUCell(input_size=1, hidden_size=H), fused gate axis (r|z|n)
    bound = 1.0 / jnp.sqrt(H)
    kih, khh, kbih, kbhh = jax.random.split(keys[3], 4)
    p["wih"] = jax.random.uniform(kih, (1, 3 * H), jnp.float32, -bound, bound)
    p["whh"] = jax.random.uniform(khh, (H, 3 * H), jnp.float32, -bound, bound)
    p["bih"] = jax.random.uniform(kbih, (1, 3 * H), jnp.float32, -bound, bound)
    p["bhh"] = jax.random.uniform(kbhh, (1, 3 * H), jnp.float32, -bound, bound)
    # decoder output MLP
    p["wd1"], p["bd1"] = linear(keys[4], H, H // 2)
    p["wd2"], p["bd2"] = linear(keys[5], H // 2, H // 4)
    p["wd3"], p["bd3"] = linear(keys[6], H // 4, 1)
    return p


def _pack_lane_slab(named):
    """Pack [1, w] arrays into one 128-lane-aligned slab (single DMA)."""
    segs, pieces, off = {}, [], 0
    for name, arr in named:
        w = arr.shape[1]
        padded = pl.cdiv(w, LANE) * LANE
        segs[name] = (off, w)
        pieces.append(jnp.pad(arr, ((0, 0), (0, padded - w))))
        off += padded
    return jnp.concatenate(pieces, axis=1).astype(jnp.float32), segs


def _pack_row_slab(named):
    """Pack 2-D weights into one sublane-stacked, 128-lane-padded slab."""
    width = max(pl.cdiv(a.shape[1], LANE) * LANE for _, a in named)
    segs, pieces, off = {}, [], 0
    for name, arr in named:
        r, c = arr.shape
        r_pad = pl.cdiv(r, SUBLANE) * SUBLANE
        segs[name] = (off, r, c)
        pieces.append(jnp.pad(arr, ((0, r_pad - r), (0, width - c))))
        off += r_pad
    return jnp.concatenate(pieces, axis=0).astype(jnp.float32), segs


def _encoder_features(encoder_input):
    """rfft features, matching torch.fft.rfft(..., dim=1, norm='forward')."""
    # TODO(synk): FFT has no Pallas TPU primitive; computed as plain-JAX glue.
    sig = encoder_input[:, :, 0]                       # [N, L]
    L = sig.shape[1]
    fft = jnp.fft.rfft(sig, axis=1) / L                # norm='forward'
    amp = jnp.abs(fft)
    phase = jnp.angle(fft)
    signal_cat_fft = jnp.concatenate([sig, amp, phase], axis=1).astype(jnp.float32)
    last = sig[:, -1:].astype(jnp.float32)             # encoder_input[:, -1, :]
    return signal_cat_fft, last


def seq_to_seq_gru(encoder_input, params, decoder_in_dim):
    N = encoder_input.shape[0]
    H = params["whh"].shape[0]
    H4 = params["wd3"].shape[0]
    L = decoder_in_dim
    signal_cat_fft, last = _encoder_features(encoder_input)
    d_in = signal_cat_fft.shape[1]

    # pad batch (sublane) dim to a multiple of 8 so MXU rows / vreg sublanes are used
    n_pad = max(SUBLANE, pl.cdiv(N, SUBLANE) * SUBLANE)
    if n_pad != N:
        signal_cat_fft = jnp.pad(signal_cat_fft, ((0, n_pad - N), (0, 0)))
        last = jnp.pad(last, ((0, n_pad - N), (0, 0)))

    out_pad = max(LANE, pl.cdiv(L, LANE) * LANE)

    # ---------------- host-side parameter folds -----------------------------
    # r/z biases of the hidden path pre-added into the input-gate bias; the n-gate
    # hidden bias must stay separate (it sits inside the r*(...) term).
    bhh_rz_ext = jnp.concatenate(
        [params["bhh"][:, :2 * H], jnp.zeros((1, H), jnp.float32)], axis=1)
    gi0_bias = params["bih"] + bhh_rz_ext                        # step-0 gi bias
    b_fold = params["bd3"] * params["wih"] + params["bih"] + bhh_rz_ext
    w_fold = params["wd3"] @ params["wih"]                       # [H/4, 3H]
    bhh_n = params["bhh"][:, 2 * H:]
    # block-diagonal wd3 for the batched post-loop projection (lane-dense output)
    wd3_big = jnp.kron(jnp.eye(L, dtype=jnp.float32), params["wd3"])   # [L*H/4, L]
    wd3_big = jnp.pad(wd3_big, ((0, 0), (0, out_pad - L)))
    bd3_row = jnp.broadcast_to(params["bd3"], (1, out_pad))

    bias_slab, bias_segs = _pack_lane_slab([
        ("b1", params["b1"]), ("b2", params["b2"]), ("bl", params["bl"]),
        ("wih", params["wih"]), ("gi0_bias", gi0_bias), ("b_fold", b_fold),
        ("bhh_n", bhh_n), ("bd1", params["bd1"]), ("bd2", params["bd2"]),
        ("bd3_row", bd3_row)])
    w_slab, w_segs = _pack_row_slab([
        ("w1", params["w1"]), ("w2", params["w2"]), ("wl", params["wl"]),
        ("whh", params["whh"]), ("wd1", params["wd1"]), ("wd2", params["wd2"]),
        ("w_fold", w_fold), ("wd3_big", wd3_big)])

    # advisory cost estimate so XLA schedules the kernel vs. the rfft glue
    enc_hidden = params["w1"].shape[1]
    flops = 2 * n_pad * (d_in * enc_hidden + enc_hidden * d_in + d_in * H)
    flops += 2 * n_pad * L * (H * 3 * H + H * (H // 2) + (H // 2) * H4)
    flops += 2 * n_pad * (L - 1) * H4 * 3 * H
    flops += 2 * n_pad * (L * H4) * out_pad
    bytes_accessed = 4 * int(signal_cat_fft.size + last.size + bias_slab.size
                             + w_slab.size + n_pad * out_pad)
    cost = pl.CostEstimate(flops=int(flops),
                           transcendentals=int(n_pad * L * 3 * H),
                           bytes_accessed=bytes_accessed)

    out2d = pl.pallas_call(
        functools.partial(
            seq2seq_kernel,
            decoder_len=L, hidden_dim=H, n_pad=n_pad,
            bias_segs=bias_segs, w_segs=w_segs),
        out_shape=jax.ShapeDtypeStruct((n_pad, out_pad), jnp.float32),
        in_specs=[pl.BlockSpec(memory_space=pltpu.MemorySpace.VMEM)] * 4,
        out_specs=pl.BlockSpec(memory_space=pltpu.MemorySpace.VMEM),
        cost_estimate=cost,
    )(signal_cat_fft, last, bias_slab, w_slab)
    return out2d[:N, :L, None]                          # [N, L_decoder, 1]


def reference_forward(encoder_input, params, decoder_in_dim):
    """Pure-JAX reference with identical semantics (for correctness check)."""
    p = params
    H = p["whh"].shape[0]
    sig, last = _encoder_features(encoder_input)
    y = _leaky(sig @ p["w1"] + p["b1"])
    y = _leaky(y @ p["w2"] + p["b2"])
    h = y @ p["wl"] + p["bl"]
    dec_in = last
    outs = []
    for _ in range(decoder_in_dim):
        gi = dec_in * p["wih"] + p["bih"]
        gh = h @ p["whh"] + p["bhh"]
        r = jax.nn.sigmoid(gi[:, :H] + gh[:, :H])
        z = jax.nn.sigmoid(gi[:, H:2 * H] + gh[:, H:2 * H])
        n = jnp.tanh(gi[:, 2 * H:] + r * gh[:, 2 * H:])
        h = (1.0 - z) * n + z * h
        yo = _leaky(h @ p["wd1"] + p["bd1"])
        yo = _leaky(yo @ p["wd2"] + p["bd2"])
        yo = yo @ p["wd3"] + p["bd3"]
        dec_in = yo                     # x.clone().detach() -> same forward value
        outs.append(yo)
    return jnp.stack(outs, axis=1)                     # [N, L_decoder, 1]


if __name__ == "__main__":
    # Small shapes consistent with the module:
    #   encoder_input_length=16, decoder_input_length=8, decoder_hidden_dim=32
    N = 2
    ENC_LEN = 16
    DEC_LEN = 8
    HIDDEN = 32

    key = jax.random.PRNGKey(0)
    k_in, k_par = jax.random.split(key)
    encoder_input = jax.random.normal(k_in, (N, ENC_LEN, 1), dtype=jnp.float32)
    params = init_params(k_par, ENC_LEN, HIDDEN)

    out = seq_to_seq_gru(encoder_input, params, DEC_LEN)
    out = jax.block_until_ready(out)

    assert out.shape == (N, DEC_LEN, 1), out.shape
    ref = reference_forward(encoder_input, params, DEC_LEN)
    assert jnp.allclose(out, ref, rtol=1e-4, atol=1e-4), (out, ref)

    print("KERNEL_OK")
</pallas_src>

<mosaic_0001>
module attributes {stable_mosaic.version = 11 : i64} {
  func.func @seq2seq_kernel(%arg0: memref<8x34xf32, #tpu.memory_space<vmem>>, %arg1: memref<8x1xf32, #tpu.memory_space<vmem>>, %arg2: memref<1x1280xf32, #tpu.memory_space<vmem>>, %arg3: memref<336x128xf32, #tpu.memory_space<vmem>>, %arg4: memref<8x128xf32, #tpu.memory_space<vmem>>) attributes {dimension_semantics = [], scalar_prefetch = 0 : i64, scratch_operands = 0 : i64, tpu.core_type = #tpu.core_type<tc>} {
    %c0 = arith.constant 0 : index
    %c0_0 = arith.constant 0 : index
    %0 = vector.load %arg0[%c0, %c0_0] : memref<8x34xf32, #tpu.memory_space<vmem>>, vector<8x34xf32>
    %c0_1 = arith.constant 0 : index
    %c0_2 = arith.constant 0 : index
    %1 = vector.load %arg3[%c0_1, %c0_2] : memref<336x128xf32, #tpu.memory_space<vmem>>, vector<34x100xf32>
    %cst = arith.constant dense<0.000000e+00> : vector<8x100xf32>
    %2 = tpu.matmul %0, %1, %cst {dimension_numbers = #tpu.dot_dimension_numbers<[1], [0], [0], [1], [0, 0, 1, 1], [], []>} : vector<8x34xf32>, vector<34x100xf32>, vector<8x100xf32> -> vector<8x100xf32>
    %c0_3 = arith.constant 0 : index
    %c0_4 = arith.constant 0 : index
    %3 = vector.load %arg2[%c0_3, %c0_4] : memref<1x1280xf32, #tpu.memory_space<vmem>>, vector<1x100xf32>
    %4 = vector.broadcast %3 : vector<1x100xf32> to vector<8x100xf32>
    %5 = arith.addf %2, %4 : vector<8x100xf32>
    %cst_5 = arith.constant 0.000000e+00 : f32
    %6 = vector.broadcast %cst_5 : f32 to vector<8x100xf32>
    %7 = arith.cmpf oge, %5, %6 : vector<8x100xf32>
    %cst_6 = arith.constant 0.00999999977 : f32
    %8 = vector.broadcast %cst_6 : f32 to vector<8x100xf32>
    %9 = arith.mulf %8, %5 : vector<8x100xf32>
    %10 = arith.select %7, %5, %9 : vector<8x100xi1>, vector<8x100xf32>
    %c40 = arith.constant 40 : index
    %c0_7 = arith.constant 0 : index
    %11 = vector.load %arg3[%c40, %c0_7] : memref<336x128xf32, #tpu.memory_space<vmem>>, vector<100x34xf32>
    %cst_8 = arith.constant dense<0.000000e+00> : vector<8x34xf32>
    %12 = tpu.matmul %10, %11, %cst_8 {dimension_numbers = #tpu.dot_dimension_numbers<[1], [0], [0], [1], [0, 0, 1, 1], [], []>} : vector<8x100xf32>, vector<100x34xf32>, vector<8x34xf32> -> vector<8x34xf32>
    %c0_9 = arith.constant 0 : index
    %c128 = arith.constant 128 : index
    %13 = vector.load %arg2[%c0_9, %c128] : memref<1x1280xf32, #tpu.memory_space<vmem>>, vector<1x34xf32>
    %14 = vector.broadcast %13 : vector<1x34xf32> to vector<8x34xf32>
    %15 = arith.addf %12, %14 : vector<8x34xf32>
    %cst_10 = arith.constant 0.000000e+00 : f32
    %16 = vector.broadcast %cst_10 : f32 to vector<8x34xf32>
    %17 = arith.cmpf oge, %15, %16 : vector<8x34xf32>
    %cst_11 = arith.constant 0.00999999977 : f32
    %18 = vector.broadcast %cst_11 : f32 to vector<8x34xf32>
    %19 = arith.mulf %18, %15 : vector<8x34xf32>
    %20 = arith.select %17, %15, %19 : vector<8x34xi1>, vector<8x34xf32>
    %c144 = arith.constant 144 : index
    %c0_12 = arith.constant 0 : index
    %21 = vector.load %arg3[%c144, %c0_12] : memref<336x128xf32, #tpu.memory_space<vmem>>, vector<34x32xf32>
    %cst_13 = arith.constant dense<0.000000e+00> : vector<8x32xf32>
    %22 = tpu.matmul %20, %21, %cst_13 {dimension_numbers = #tpu.dot_dimension_numbers<[1], [0], [0], [1], [0, 0, 1, 1], [], []>} : vector<8x34xf32>, vector<34x32xf32>, vector<8x32xf32> -> vector<8x32xf32>
    %c0_14 = arith.constant 0 : index
    %c256 = arith.constant 256 : index
    %23 = vector.load %arg2[%c0_14, %c256] : memref<1x1280xf32, #tpu.memory_space<vmem>>, vector<1x32xf32>
    %24 = vector.broadcast %23 : vector<1x32xf32> to vector<8x32xf32>
    %25 = arith.addf %22, %24 : vector<8x32xf32>
    %c184 = arith.constant 184 : index
    %c0_15 = arith.constant 0 : index
    %26 = vector.load %arg3[%c184, %c0_15] : memref<336x128xf32, #tpu.memory_space<vmem>>, vector<32x96xf32>
    %c216 = arith.constant 216 : index
    %c0_16 = arith.constant 0 : index
    %27 = vector.load %arg3[%c216, %c0_16] : memref<336x128xf32, #tpu.memory_space<vmem>>, vector<32x16xf32>
    %c248 = arith.constant 248 : index
    %c0_17 = arith.constant 0 : index
    %28 = vector.load %arg3[%c248, %c0_17] : memref<336x128xf32, #tpu.memory_space<vmem>>, vector<16x8xf32>
    %c264 = arith.constant 264 : index
    %c0_18 = arith.constant 0 : index
    %29 = vector.load %arg3[%c264, %c0_18] : memref<336x128xf32, #tpu.memory_space<vmem>>, vector<8x96xf32>
    %c0_19 = arith.constant 0 : index
    %c640 = arith.constant 640 : index
    %30 = vector.load %arg2[%c0_19, %c640] : memref<1x1280xf32, #tpu.memory_space<vmem>>, vector<1x96xf32>
    %31 = vector.shape_cast %30 : vector<1x96xf32> to vector<1x96xf32>
    %32 = vector.broadcast %31 : vector<1x96xf32> to vector<8x96xf32>
    %c0_20 = arith.constant 0 : index
    %c768 = arith.constant 768 : index
    %33 = vector.load %arg2[%c0_20, %c768] : memref<1x1280xf32, #tpu.memory_space<vmem>>, vector<1x32xf32>
    %34 = vector.shape_cast %33 : vector<1x32xf32> to vector<1x32xf32>
    %35 = vector.broadcast %34 : vector<1x32xf32> to vector<8x32xf32>
    %c0_21 = arith.constant 0 : index
    %c896 = arith.constant 896 : index
    %36 = vector.load %arg2[%c0_21, %c896] : memref<1x1280xf32, #tpu.memory_space<vmem>>, vector<1x16xf32>
    %37 = vector.shape_cast %36 : vector<1x16xf32> to vector<1x16xf32>
    %38 = vector.broadcast %37 : vector<1x16xf32> to vector<8x16xf32>
    %c0_22 = arith.constant 0 : index
    %c1024 = arith.constant 1024 : index
    %39 = vector.load %arg2[%c0_22, %c1024] : memref<1x1280xf32, #tpu.memory_space<vmem>>, vector<1x8xf32>
    %40 = vector.shape_cast %39 : vector<1x8xf32> to vector<1x8xf32>
    %41 = vector.broadcast %40 : vector<1x8xf32> to vector<8x8xf32>
    %c0_23 = arith.constant 0 : index
    %c0_24 = arith.constant 0 : index
    %42 = vector.load %arg1[%c0_23, %c0_24] : memref<8x1xf32, #tpu.memory_space<vmem>>, vector<8x1xf32>
    %c0_25 = arith.constant 0 : index
    %c384 = arith.constant 384 : index
    %43 = vector.load %arg2[%c0_25, %c384] : memref<1x1280xf32, #tpu.memory_space<vmem>>, vector<1x96xf32>
    %44 = vector.broadcast %42 : vector<8x1xf32> to vector<8x96xf32>
    %45 = vector.broadcast %43 : vector<1x96xf32> to vector<8x96xf32>
    %46 = arith.mulf %44, %45 : vector<8x96xf32>
    %c0_26 = arith.constant 0 : index
    %c512 = arith.constant 512 : index
    %47 = vector.load %arg2[%c0_26, %c512] : memref<1x1280xf32, #tpu.memory_space<vmem>>, vector<1x96xf32>
    %48 = vector.broadcast %47 : vector<1x96xf32> to vector<8x96xf32>
    %49 = arith.addf %46, %48 : vector<8x96xf32>
    %cst_27 = arith.constant dense<0.000000e+00> : vector<8x96xf32>
    %50 = tpu.matmul %25, %26, %cst_27 {dimension_numbers = #tpu.dot_dimension_numbers<[1], [0], [0], [1], [0, 0, 1, 1], [], []>} : vector<8x32xf32>, vector<32x96xf32>, vector<8x96xf32> -> vector<8x96xf32>
    %51 = vector.extract_strided_slice %49 {offsets = [0, 0], sizes = [8, 64], strides = [1, 1]} : vector<8x96xf32> to vector<8x64xf32>
    %52 = vector.extract_strided_slice %50 {offsets = [0, 0], sizes = [8, 64], strides = [1, 1]} : vector<8x96xf32> to vector<8x64xf32>
    %53 = arith.addf %51, %52 : vector<8x64xf32>
    %54 = arith.negf %53 : vector<8x64xf32>
    %55 = math.exp %54 : vector<8x64xf32>
    %cst_28 = arith.constant 1.000000e+00 : f32
    %56 = vector.broadcast %cst_28 : f32 to vector<8x64xf32>
    %57 = arith.addf %56, %55 : vector<8x64xf32>
    %58 = arith.divf %56, %57 : vector<8x64xf32>
    %59 = vector.extract_strided_slice %58 {offsets = [0, 0], sizes = [8, 32], strides = [1, 1]} : vector<8x64xf32> to vector<8x32xf32>
    %60 = vector.extract_strided_slice %58 {offsets = [0, 32], sizes = [8, 32], strides = [1, 1]} : vector<8x64xf32> to vector<8x32xf32>
    %61 = vector.extract_strided_slice %49 {offsets = [0, 64], sizes = [8, 32], strides = [1, 1]} : vector<8x96xf32> to vector<8x32xf32>
    %62 = vector.extract_strided_slice %50 {offsets = [0, 64], sizes = [8, 32], strides = [1, 1]} : vector<8x96xf32> to vector<8x32xf32>
    %63 = arith.addf %62, %35 : vector<8x32xf32>
    %64 = arith.mulf %59, %63 : vector<8x32xf32>
    %65 = arith.addf %61, %64 : vector<8x32xf32>
    %66 = math.tanh %65 : vector<8x32xf32>
    %cst_29 = arith.constant 1.000000e+00 : f32
    %67 = vector.broadcast %cst_29 : f32 to vector<8x32xf32>
    %68 = arith.subf %67, %60 : vector<8x32xf32>
    %69 = arith.mulf %68, %66 : vector<8x32xf32>
    %70 = arith.mulf %60, %25 : vector<8x32xf32>
    %71 = arith.addf %69, %70 : vector<8x32xf32>
    %cst_30 = arith.constant dense<0.000000e+00> : vector<8x16xf32>
    %72 = tpu.matmul %71, %27, %cst_30 {dimension_numbers = #tpu.dot_dimension_numbers<[1], [0], [0], [1], [0, 0, 1, 1], [], []>} : vector<8x32xf32>, vector<32x16xf32>, vector<8x16xf32> -> vector<8x16xf32>
    %73 = arith.addf %72, %38 : vector<8x16xf32>
    %cst_31 = arith.constant 0.000000e+00 : f32
    %74 = vector.broadcast %cst_31 : f32 to vector<8x16xf32>
    %75 = arith.cmpf oge, %73, %74 : vector<8x16xf32>
    %cst_32 = arith.constant 0.00999999977 : f32
    %76 = vector.broadcast %cst_32 : f32 to vector<8x16xf32>
    %77 = arith.mulf %76, %73 : vector<8x16xf32>
    %78 = arith.select %75, %73, %77 : vector<8x16xi1>, vector<8x16xf32>
    %cst_33 = arith.constant dense<0.000000e+00> : vector<8x8xf32>
    %79 = tpu.matmul %78, %28, %cst_33 {dimension_numbers = #tpu.dot_dimension_numbers<[1], [0], [0], [1], [0, 0, 1, 1], [], []>} : vector<8x16xf32>, vector<16x8xf32>, vector<8x8xf32> -> vector<8x8xf32>
    %80 = arith.addf %79, %41 : vector<8x8xf32>
    %cst_34 = arith.constant 0.000000e+00 : f32
    %81 = vector.broadcast %cst_34 : f32 to vector<8x8xf32>
    %82 = arith.cmpf oge, %80, %81 : vector<8x8xf32>
    %cst_35 = arith.constant 0.00999999977 : f32
    %83 = vector.broadcast %cst_35 : f32 to vector<8x8xf32>
    %84 = arith.mulf %83, %80 : vector<8x8xf32>
    %85 = arith.select %82, %80, %84 : vector<8x8xi1>, vector<8x8xf32>
    %cst_36 = arith.constant dense<0.000000e+00> : vector<8x96xf32>
    %86 = tpu.matmul %85, %29, %cst_36 {dimension_numbers = #tpu.dot_dimension_numbers<[1], [0], [0], [1], [0, 0, 1, 1], [], []>} : vector<8x8xf32>, vector<8x96xf32>, vector<8x96xf32> -> vector<8x96xf32>
    %87 = arith.addf %86, %32 : vector<8x96xf32>
    %cst_37 = arith.constant dense<0.000000e+00> : vector<8x96xf32>
    %88 = tpu.matmul %71, %26, %cst_37 {dimension_numbers = #tpu.dot_dimension_numbers<[1], [0], [0], [1], [0, 0, 1, 1], [], []>} : vector<8x32xf32>, vector<32x96xf32>, vector<8x96xf32> -> vector<8x96xf32>
    %89 = vector.extract_strided_slice %87 {offsets = [0, 0], sizes = [8, 64], strides = [1, 1]} : vector<8x96xf32> to vector<8x64xf32>
    %90 = vector.extract_strided_slice %88 {offsets = [0, 0], sizes = [8, 64], strides = [1, 1]} : vector<8x96xf32> to vector<8x64xf32>
    %91 = arith.addf %89, %90 : vector<8x64xf32>
    %92 = arith.negf %91 : vector<8x64xf32>
    %93 = math.exp %92 : vector<8x64xf32>
    %cst_38 = arith.constant 1.000000e+00 : f32
    %94 = vector.broadcast %cst_38 : f32 to vector<8x64xf32>
    %95 = arith.addf %94, %93 : vector<8x64xf32>
    %96 = arith.divf %94, %95 : vector<8x64xf32>
    %97 = vector.extract_strided_slice %96 {offsets = [0, 0], sizes = [8, 32], strides = [1, 1]} : vector<8x64xf32> to vector<8x32xf32>
    %98 = vector.extract_strided_slice %96 {offsets = [0, 32], sizes = [8, 32], strides = [1, 1]} : vector<8x64xf32> to vector<8x32xf32>
    %99 = vector.extract_strided_slice %87 {offsets = [0, 64], sizes = [8, 32], strides = [1, 1]} : vector<8x96xf32> to vector<8x32xf32>
    %100 = vector.extract_strided_slice %88 {offsets = [0, 64], sizes = [8, 32], strides = [1, 1]} : vector<8x96xf32> to vector<8x32xf32>
    %101 = arith.addf %100, %35 : vector<8x32xf32>
    %102 = arith.mulf %97, %101 : vector<8x32xf32>
    %103 = arith.addf %99, %102 : vector<8x32xf32>
    %104 = math.tanh %103 : vector<8x32xf32>
    %cst_39 = arith.constant 1.000000e+00 : f32
    %105 = vector.broadcast %cst_39 : f32 to vector<8x32xf32>
    %106 = arith.subf %105, %98 : vector<8x32xf32>
    %107 = arith.mulf %106, %104 : vector<8x32xf32>
    %108 = arith.mulf %98, %71 : vector<8x32xf32>
    %109 = arith.addf %107, %108 : vector<8x32xf32>
    %cst_40 = arith.constant dense<0.000000e+00> : vector<8x16xf32>
    %110 = tpu.matmul %109, %27, %cst_40 {dimension_numbers = #tpu.dot_dimension_numbers<[1], [0], [0], [1], [0, 0, 1, 1], [], []>} : vector<8x32xf32>, vector<32x16xf32>, vector<8x16xf32> -> vector<8x16xf32>
    %111 = arith.addf %110, %38 : vector<8x16xf32>
    %cst_41 = arith.constant 0.000000e+00 : f32
    %112 = vector.broadcast %cst_41 : f32 to vector<8x16xf32>
    %113 = arith.cmpf oge, %111, %112 : vector<8x16xf32>
    %cst_42 = arith.constant 0.00999999977 : f32
    %114 = vector.broadcast %cst_42 : f32 to vector<8x16xf32>
    %115 = arith.mulf %114, %111 : vector<8x16xf32>
    %116 = arith.select %113, %111, %115 : vector<8x16xi1>, vector<8x16xf32>
    %cst_43 = arith.constant dense<0.000000e+00> : vector<8x8xf32>
    %117 = tpu.matmul %116, %28, %cst_43 {dimension_numbers = #tpu.dot_dimension_numbers<[1], [0], [0], [1], [0, 0, 1, 1], [], []>} : vector<8x16xf32>, vector<16x8xf32>, vector<8x8xf32> -> vector<8x8xf32>
    %118 = arith.addf %117, %41 : vector<8x8xf32>
    %cst_44 = arith.constant 0.000000e+00 : f32
    %119 = vector.broadcast %cst_44 : f32 to vector<8x8xf32>
    %120 = arith.cmpf oge, %118, %119 : vector<8x8xf32>
    %cst_45 = arith.constant 0.00999999977 : f32
    %121 = vector.broadcast %cst_45 : f32 to vector<8x8xf32>
    %122 = arith.mulf %121, %118 : vector<8x8xf32>
    %123 = arith.select %120, %118, %122 : vector<8x8xi1>, vector<8x8xf32>
    %cst_46 = arith.constant dense<0.000000e+00> : vector<8x96xf32>
    %124 = tpu.matmul %123, %29, %cst_46 {dimension_numbers = #tpu.dot_dimension_numbers<[1], [0], [0], [1], [0, 0, 1, 1], [], []>} : vector<8x8xf32>, vector<8x96xf32>, vector<8x96xf32> -> vector<8x96xf32>
    %125 = arith.addf %124, %32 : vector<8x96xf32>
    %cst_47 = arith.constant dense<0.000000e+00> : vector<8x96xf32>
    %126 = tpu.matmul %109, %26, %cst_47 {dimension_numbers = #tpu.dot_dimension_numbers<[1], [0], [0], [1], [0, 0, 1, 1], [], []>} : vector<8x32xf32>, vector<32x96xf32>, vector<8x96xf32> -> vector<8x96xf32>
    %127 = vector.extract_strided_slice %125 {offsets = [0, 0], sizes = [8, 64], strides = [1, 1]} : vector<8x96xf32> to vector<8x64xf32>
    %128 = vector.extract_strided_slice %126 {offsets = [0, 0], sizes = [8, 64], strides = [1, 1]} : vector<8x96xf32> to vector<8x64xf32>
    %129 = arith.addf %127, %128 : vector<8x64xf32>
    %130 = arith.negf %129 : vector<8x64xf32>
    %131 = math.exp %130 : vector<8x64xf32>
    %cst_48 = arith.constant 1.000000e+00 : f32
    %132 = vector.broadcast %cst_48 : f32 to vector<8x64xf32>
    %133 = arith.addf %132, %131 : vector<8x64xf32>
    %134 = arith.divf %132, %133 : vector<8x64xf32>
    %135 = vector.extract_strided_slice %134 {offsets = [0, 0], sizes = [8, 32], strides = [1, 1]} : vector<8x64xf32> to vector<8x32xf32>
    %136 = vector.extract_strided_slice %134 {offsets = [0, 32], sizes = [8, 32], strides = [1, 1]} : vector<8x64xf32> to vector<8x32xf32>
    %137 = vector.extract_strided_slice %125 {offsets = [0, 64], sizes = [8, 32], strides = [1, 1]} : vector<8x96xf32> to vector<8x32xf32>
    %138 = vector.extract_strided_slice %126 {offsets = [0, 64], sizes = [8, 32], strides = [1, 1]} : vector<8x96xf32> to vector<8x32xf32>
    %139 = arith.addf %138, %35 : vector<8x32xf32>
    %140 = arith.mulf %135, %139 : vector<8x32xf32>
    %141 = arith.addf %137, %140 : vector<8x32xf32>
    %142 = math.tanh %141 : vector<8x32xf32>
    %cst_49 = arith.constant 1.000000e+00 : f32
    %143 = vector.broadcast %cst_49 : f32 to vector<8x32xf32>
    %144 = arith.subf %143, %136 : vector<8x32xf32>
    %145 = arith.mulf %144, %142 : vector<8x32xf32>
    %146 = arith.mulf %136, %109 : vector<8x32xf32>
    %147 = arith.addf %145, %146 : vector<8x32xf32>
    %cst_50 = arith.constant dense<0.000000e+00> : vector<8x16xf32>
    %148 = tpu.matmul %147, %27, %cst_50 {dimension_numbers = #tpu.dot_dimension_numbers<[1], [0], [0], [1], [0, 0, 1, 1], [], []>} : vector<8x32xf32>, vector<32x16xf32>, vector<8x16xf32> -> vector<8x16xf32>
    %149 = arith.addf %148, %38 : vector<8x16xf32>
    %cst_51 = arith.constant 0.000000e+00 : f32
    %150 = vector.broadcast %cst_51 : f32 to vector<8x16xf32>
    %151 = arith.cmpf oge, %149, %150 : vector<8x16xf32>
    %cst_52 = arith.constant 0.00999999977 : f32
    %152 = vector.broadcast %cst_52 : f32 to vector<8x16xf32>
    %153 = arith.mulf %152, %149 : vector<8x16xf32>
    %154 = arith.select %151, %149, %153 : vector<8x16xi1>, vector<8x16xf32>
    %cst_53 = arith.constant dense<0.000000e+00> : vector<8x8xf32>
    %155 = tpu.matmul %154, %28, %cst_53 {dimension_numbers = #tpu.dot_dimension_numbers<[1], [0], [0], [1], [0, 0, 1, 1], [], []>} : vector<8x16xf32>, vector<16x8xf32>, vector<8x8xf32> -> vector<8x8xf32>
    %156 = arith.addf %155, %41 : vector<8x8xf32>
    %cst_54 = arith.constant 0.000000e+00 : f32
    %157 = vector.broadcast %cst_54 : f32 to vector<8x8xf32>
    %158 = arith.cmpf oge, %156, %157 : vector<8x8xf32>
    %cst_55 = arith.constant 0.00999999977 : f32
    %159 = vector.broadcast %cst_55 : f32 to vector<8x8xf32>
    %160 = arith.mulf %159, %156 : vector<8x8xf32>
    %161 = arith.select %158, %156, %160 : vector<8x8xi1>, vector<8x8xf32>
    %cst_56 = arith.constant dense<0.000000e+00> : vector<8x96xf32>
    %162 = tpu.matmul %161, %29, %cst_56 {dimension_numbers = #tpu.dot_dimension_numbers<[1], [0], [0], [1], [0, 0, 1, 1], [], []>} : vector<8x8xf32>, vector<8x96xf32>, vector<8x96xf32> -> vector<8x96xf32>
    %163 = arith.addf %162, %32 : vector<8x96xf32>
    %cst_57 = arith.constant dense<0.000000e+00> : vector<8x96xf32>
    %164 = tpu.matmul %147, %26, %cst_57 {dimension_numbers = #tpu.dot_dimension_numbers<[1], [0], [0], [1], [0, 0, 1, 1], [], []>} : vector<8x32xf32>, vector<32x96xf32>, vector<8x96xf32> -> vector<8x96xf32>
    %165 = vector.extract_strided_slice %163 {offsets = [0, 0], sizes = [8, 64], strides = [1, 1]} : vector<8x96xf32> to vector<8x64xf32>
    %166 = vector.extract_strided_slice %164 {offsets = [0, 0], sizes = [8, 64], strides = [1, 1]} : vector<8x96xf32> to vector<8x64xf32>
    %167 = arith.addf %165, %166 : vector<8x64xf32>
    %168 = arith.negf %167 : vector<8x64xf32>
    %169 = math.exp %168 : vector<8x64xf32>
    %cst_58 = arith.constant 1.000000e+00 : f32
    %170 = vector.broadcast %cst_58 : f32 to vector<8x64xf32>
    %171 = arith.addf %170, %169 : vector<8x64xf32>
    %172 = arith.divf %170, %171 : vector<8x64xf32>
    %173 = vector.extract_strided_slice %172 {offsets = [0, 0], sizes = [8, 32], strides = [1, 1]} : vector<8x64xf32> to vector<8x32xf32>
    %174 = vector.extract_strided_slice %172 {offsets = [0, 32], sizes = [8, 32], strides = [1, 1]} : vector<8x64xf32> to vector<8x32xf32>
    %175 = vector.extract_strided_slice %163 {offsets = [0, 64], sizes = [8, 32], strides = [1, 1]} : vector<8x96xf32> to vector<8x32xf32>
    %176 = vector.extract_strided_slice %164 {offsets = [0, 64], sizes = [8, 32], strides = [1, 1]} : vector<8x96xf32> to vector<8x32xf32>
    %177 = arith.addf %176, %35 : vector<8x32xf32>
    %178 = arith.mulf %173, %177 : vector<8x32xf32>
    %179 = arith.addf %175, %178 : vector<8x32xf32>
    %180 = math.tanh %179 : vector<8x32xf32>
    %cst_59 = arith.constant 1.000000e+00 : f32
    %181 = vector.broadcast %cst_59 : f32 to vector<8x32xf32>
    %182 = arith.subf %181, %174 : vector<8x32xf32>
    %183 = arith.mulf %182, %180 : vector<8x32xf32>
    %184 = arith.mulf %174, %147 : vector<8x32xf32>
    %185 = arith.addf %183, %184 : vector<8x32xf32>
    %cst_60 = arith.constant dense<0.000000e+00> : vector<8x16xf32>
    %186 = tpu.matmul %185, %27, %cst_60 {dimension_numbers = #tpu.dot_dimension_numbers<[1], [0], [0], [1], [0, 0, 1, 1], [], []>} : vector<8x32xf32>, vector<32x16xf32>, vector<8x16xf32> -> vector<8x16xf32>
    %187 = arith.addf %186, %38 : vector<8x16xf32>
    %cst_61 = arith.constant 0.000000e+00 : f32
    %188 = vector.broadcast %cst_61 : f32 to vector<8x16xf32>
    %189 = arith.cmpf oge, %187, %188 : vector<8x16xf32>
    %cst_62 = arith.constant 0.00999999977 : f32
    %190 = vector.broadcast %cst_62 : f32 to vector<8x16xf32>
    %191 = arith.mulf %190, %187 : vector<8x16xf32>
    %192 = arith.select %189, %187, %191 : vector<8x16xi1>, vector<8x16xf32>
    %cst_63 = arith.constant dense<0.000000e+00> : vector<8x8xf32>
    %193 = tpu.matmul %192, %28, %cst_63 {dimension_numbers = #tpu.dot_dimension_numbers<[1], [0], [0], [1], [0, 0, 1, 1], [], []>} : vector<8x16xf32>, vector<16x8xf32>, vector<8x8xf32> -> vector<8x8xf32>
    %194 = arith.addf %193, %41 : vector<8x8xf32>
    %cst_64 = arith.constant 0.000000e+00 : f32
    %195 = vector.broadcast %cst_64 : f32 to vector<8x8xf32>
    %196 = arith.cmpf oge, %194, %195 : vector<8x8xf32>
    %cst_65 = arith.constant 0.00999999977 : f32
    %197 = vector.broadcast %cst_65 : f32 to vector<8x8xf32>
    %198 = arith.mulf %197, %194 : vector<8x8xf32>
    %199 = arith.select %196, %194, %198 : vector<8x8xi1>, vector<8x8xf32>
    %cst_66 = arith.constant dense<0.000000e+00> : vector<8x96xf32>
    %200 = tpu.matmul %199, %29, %cst_66 {dimension_numbers = #tpu.dot_dimension_numbers<[1], [0], [0], [1], [0, 0, 1, 1], [], []>} : vector<8x8xf32>, vector<8x96xf32>, vector<8x96xf32> -> vector<8x96xf32>
    %201 = arith.addf %200, %32 : vector<8x96xf32>
    %cst_67 = arith.constant dense<0.000000e+00> : vector<8x96xf32>
    %202 = tpu.matmul %185, %26, %cst_67 {dimension_numbers = #tpu.dot_dimension_numbers<[1], [0], [0], [1], [0, 0, 1, 1], [], []>} : vector<8x32xf32>, vector<32x96xf32>, vector<8x96xf32> -> vector<8x96xf32>
    %203 = vector.extract_strided_slice %201 {offsets = [0, 0], sizes = [8, 64], strides = [1, 1]} : vector<8x96xf32> to vector<8x64xf32>
    %204 = vector.extract_strided_slice %202 {offsets = [0, 0], sizes = [8, 64], strides = [1, 1]} : vector<8x96xf32> to vector<8x64xf32>
    %205 = arith.addf %203, %204 : vector<8x64xf32>
    %206 = arith.negf %205 : vector<8x64xf32>
    %207 = math.exp %206 : vector<8x64xf32>
    %cst_68 = arith.constant 1.000000e+00 : f32
    %208 = vector.broadcast %cst_68 : f32 to vector<8x64xf32>
    %209 = arith.addf %208, %207 : vector<8x64xf32>
    %210 = arith.divf %208, %209 : vector<8x64xf32>
    %211 = vector.extract_strided_slice %210 {offsets = [0, 0], sizes = [8, 32], strides = [1, 1]} : vector<8x64xf32> to vector<8x32xf32>
    %212 = vector.extract_strided_slice %210 {offsets = [0, 32], sizes = [8, 32], strides = [1, 1]} : vector<8x64xf32> to vector<8x32xf32>
    %213 = vector.extract_strided_slice %201 {offsets = [0, 64], sizes = [8, 32], strides = [1, 1]} : vector<8x96xf32> to vector<8x32xf32>
    %214 = vector.extract_strided_slice %202 {offsets = [0, 64], sizes = [8, 32], strides = [1, 1]} : vector<8x96xf32> to vector<8x32xf32>
    %215 = arith.addf %214, %35 : vector<8x32xf32>
    %216 = arith.mulf %211, %215 : vector<8x32xf32>
    %217 = arith.addf %213, %216 : vector<8x32xf32>
    %218 = math.tanh %217 : vector<8x32xf32>
    %cst_69 = arith.constant 1.000000e+00 : f32
    %219 = vector.broadcast %cst_69 : f32 to vector<8x32xf32>
    %220 = arith.subf %219, %212 : vector<8x32xf32>
    %221 = arith.mulf %220, %218 : vector<8x32xf32>
    %222 = arith.mulf %212, %185 : vector<8x32xf32>
    %223 = arith.addf %221, %222 : vector<8x32xf32>
    %cst_70 = arith.constant dense<0.000000e+00> : vector<8x16xf32>
    %224 = tpu.matmul %223, %27, %cst_70 {dimension_numbers = #tpu.dot_dimension_numbers<[1], [0], [0], [1], [0, 0, 1, 1], [], []>} : vector<8x32xf32>, vector<32x16xf32>, vector<8x16xf32> -> vector<8x16xf32>
    %225 = arith.addf %224, %38 : vector<8x16xf32>
    %cst_71 = arith.constant 0.000000e+00 : f32
    %226 = vector.broadcast %cst_71 : f32 to vector<8x16xf32>
    %227 = arith.cmpf oge, %225, %226 : vector<8x16xf32>
    %cst_72 = arith.constant 0.00999999977 : f32
    %228 = vector.broadcast %cst_72 : f32 to vector<8x16xf32>
    %229 = arith.mulf %228, %225 : vector<8x16xf32>
    %230 = arith.select %227, %225, %229 : vector<8x16xi1>, vector<8x16xf32>
    %cst_73 = arith.constant dense<0.000000e+00> : vector<8x8xf32>
    %231 = tpu.matmul %230, %28, %cst_73 {dimension_numbers = #tpu.dot_dimension_numbers<[1], [0], [0], [1], [0, 0, 1, 1], [], []>} : vector<8x16xf32>, vector<16x8xf32>, vector<8x8xf32> -> vector<8x8xf32>
    %232 = arith.addf %231, %41 : vector<8x8xf32>
    %cst_74 = arith.constant 0.000000e+00 : f32
    %233 = vector.broadcast %cst_74 : f32 to vector<8x8xf32>
    %234 = arith.cmpf oge, %232, %233 : vector<8x8xf32>
    %cst_75 = arith.constant 0.00999999977 : f32
    %235 = vector.broadcast %cst_75 : f32 to vector<8x8xf32>
    %236 = arith.mulf %235, %232 : vector<8x8xf32>
    %237 = arith.select %234, %232, %236 : vector<8x8xi1>, vector<8x8xf32>
    %cst_76 = arith.constant dense<0.000000e+00> : vector<8x96xf32>
    %238 = tpu.matmul %237, %29, %cst_76 {dimension_numbers = #tpu.dot_dimension_numbers<[1], [0], [0], [1], [0, 0, 1, 1], [], []>} : vector<8x8xf32>, vector<8x96xf32>, vector<8x96xf32> -> vector<8x96xf32>
    %239 = arith.addf %238, %32 : vector<8x96xf32>
    %cst_77 = arith.constant dense<0.000000e+00> : vector<8x96xf32>
    %240 = tpu.matmul %223, %26, %cst_77 {dimension_numbers = #tpu.dot_dimension_numbers<[1], [0], [0], [1], [0, 0, 1, 1], [], []>} : vector<8x32xf32>, vector<32x96xf32>, vector<8x96xf32> -> vector<8x96xf32>
    %241 = vector.extract_strided_slice %239 {offsets = [0, 0], sizes = [8, 64], strides = [1, 1]} : vector<8x96xf32> to vector<8x64xf32>
    %242 = vector.extract_strided_slice %240 {offsets = [0, 0], sizes = [8, 64], strides = [1, 1]} : vector<8x96xf32> to vector<8x64xf32>
    %243 = arith.addf %241, %242 : vector<8x64xf32>
    %244 = arith.negf %243 : vector<8x64xf32>
    %245 = math.exp %244 : vector<8x64xf32>
    %cst_78 = arith.constant 1.000000e+00 : f32
    %246 = vector.broadcast %cst_78 : f32 to vector<8x64xf32>
    %247 = arith.addf %246, %245 : vector<8x64xf32>
    %248 = arith.divf %246, %247 : vector<8x64xf32>
    %249 = vector.extract_strided_slice %248 {offsets = [0, 0], sizes = [8, 32], strides = [1, 1]} : vector<8x64xf32> to vector<8x32xf32>
    %250 = vector.extract_strided_slice %248 {offsets = [0, 32], sizes = [8, 32], strides = [1, 1]} : vector<8x64xf32> to vector<8x32xf32>
    %251 = vector.extract_strided_slice %239 {offsets = [0, 64], sizes = [8, 32], strides = [1, 1]} : vector<8x96xf32> to vector<8x32xf32>
    %252 = vector.extract_strided_slice %240 {offsets = [0, 64], sizes = [8, 32], strides = [1, 1]} : vector<8x96xf32> to vector<8x32xf32>
    %253 = arith.addf %252, %35 : vector<8x32xf32>
    %254 = arith.mulf %249, %253 : vector<8x32xf32>
    %255 = arith.addf %251, %254 : vector<8x32xf32>
    %256 = math.tanh %255 : vector<8x32xf32>
    %cst_79 = arith.constant 1.000000e+00 : f32
    %257 = vector.broadcast %cst_79 : f32 to vector<8x32xf32>
    %258 = arith.subf %257, %250 : vector<8x32xf32>
    %259 = arith.mulf %258, %256 : vector<8x32xf32>
    %260 = arith.mulf %250, %223 : vector<8x32xf32>
    %261 = arith.addf %259, %260 : vector<8x32xf32>
    %cst_80 = arith.constant dense<0.000000e+00> : vector<8x16xf32>
    %262 = tpu.matmul %261, %27, %cst_80 {dimension_numbers = #tpu.dot_dimension_numbers<[1], [0], [0], [1], [0, 0, 1, 1], [], []>} : vector<8x32xf32>, vector<32x16xf32>, vector<8x16xf32> -> vector<8x16xf32>
    %263 = arith.addf %262, %38 : vector<8x16xf32>
    %cst_81 = arith.constant 0.000000e+00 : f32
    %264 = vector.broadcast %cst_81 : f32 to vector<8x16xf32>
    %265 = arith.cmpf oge, %263, %264 : vector<8x16xf32>
    %cst_82 = arith.constant 0.00999999977 : f32
    %266 = vector.broadcast %cst_82 : f32 to vector<8x16xf32>
    %267 = arith.mulf %266, %263 : vector<8x16xf32>
    %268 = arith.select %265, %263, %267 : vector<8x16xi1>, vector<8x16xf32>
    %cst_83 = arith.constant dense<0.000000e+00> : vector<8x8xf32>
    %269 = tpu.matmul %268, %28, %cst_83 {dimension_numbers = #tpu.dot_dimension_numbers<[1], [0], [0], [1], [0, 0, 1, 1], [], []>} : vector<8x16xf32>, vector<16x8xf32>, vector<8x8xf32> -> vector<8x8xf32>
    %270 = arith.addf %269, %41 : vector<8x8xf32>
    %cst_84 = arith.constant 0.000000e+00 : f32
    %271 = vector.broadcast %cst_84 : f32 to vector<8x8xf32>
    %272 = arith.cmpf oge, %270, %271 : vector<8x8xf32>
    %cst_85 = arith.constant 0.00999999977 : f32
    %273 = vector.broadcast %cst_85 : f32 to vector<8x8xf32>
    %274 = arith.mulf %273, %270 : vector<8x8xf32>
    %275 = arith.select %272, %270, %274 : vector<8x8xi1>, vector<8x8xf32>
    %cst_86 = arith.constant dense<0.000000e+00> : vector<8x96xf32>
    %276 = tpu.matmul %275, %29, %cst_86 {dimension_numbers = #tpu.dot_dimension_numbers<[1], [0], [0], [1], [0, 0, 1, 1], [], []>} : vector<8x8xf32>, vector<8x96xf32>, vector<8x96xf32> -> vector<8x96xf32>
    %277 = arith.addf %276, %32 : vector<8x96xf32>
    %cst_87 = arith.constant dense<0.000000e+00> : vector<8x96xf32>
    %278 = tpu.matmul %261, %26, %cst_87 {dimension_numbers = #tpu.dot_dimension_numbers<[1], [0], [0], [1], [0, 0, 1, 1], [], []>} : vector<8x32xf32>, vector<32x96xf32>, vector<8x96xf32> -> vector<8x96xf32>
    %279 = vector.extract_strided_slice %277 {offsets = [0, 0], sizes = [8, 64], strides = [1, 1]} : vector<8x96xf32> to vector<8x64xf32>
    %280 = vector.extract_strided_slice %278 {offsets = [0, 0], sizes = [8, 64], strides = [1, 1]} : vector<8x96xf32> to vector<8x64xf32>
    %281 = arith.addf %279, %280 : vector<8x64xf32>
    %282 = arith.negf %281 : vector<8x64xf32>
    %283 = math.exp %282 : vector<8x64xf32>
    %cst_88 = arith.constant 1.000000e+00 : f32
    %284 = vector.broadcast %cst_88 : f32 to vector<8x64xf32>
    %285 = arith.addf %284, %283 : vector<8x64xf32>
    %286 = arith.divf %284, %285 : vector<8x64xf32>
    %287 = vector.extract_strided_slice %286 {offsets = [0, 0], sizes = [8, 32], strides = [1, 1]} : vector<8x64xf32> to vector<8x32xf32>
    %288 = vector.extract_strided_slice %286 {offsets = [0, 32], sizes = [8, 32], strides = [1, 1]} : vector<8x64xf32> to vector<8x32xf32>
    %289 = vector.extract_strided_slice %277 {offsets = [0, 64], sizes = [8, 32], strides = [1, 1]} : vector<8x96xf32> to vector<8x32xf32>
    %290 = vector.extract_strided_slice %278 {offsets = [0, 64], sizes = [8, 32], strides = [1, 1]} : vector<8x96xf32> to vector<8x32xf32>
    %291 = arith.addf %290, %35 : vector<8x32xf32>
    %292 = arith.mulf %287, %291 : vector<8x32xf32>
    %293 = arith.addf %289, %292 : vector<8x32xf32>
    %294 = math.tanh %293 : vector<8x32xf32>
    %cst_89 = arith.constant 1.000000e+00 : f32
    %295 = vector.broadcast %cst_89 : f32 to vector<8x32xf32>
    %296 = arith.subf %295, %288 : vector<8x32xf32>
    %297 = arith.mulf %296, %294 : vector<8x32xf32>
    %298 = arith.mulf %288, %261 : vector<8x32xf32>
    %299 = arith.addf %297, %298 : vector<8x32xf32>
    %cst_90 = arith.constant dense<0.000000e+00> : vector<8x16xf32>
    %300 = tpu.matmul %299, %27, %cst_90 {dimension_numbers = #tpu.dot_dimension_numbers<[1], [0], [0], [1], [0, 0, 1, 1], [], []>} : vector<8x32xf32>, vector<32x16xf32>, vector<8x16xf32> -> vector<8x16xf32>
    %301 = arith.addf %300, %38 : vector<8x16xf32>
    %cst_91 = arith.constant 0.000000e+00 : f32
    %302 = vector.broadcast %cst_91 : f32 to vector<8x16xf32>
    %303 = arith.cmpf oge, %301, %302 : vector<8x16xf32>
    %cst_92 = arith.constant 0.00999999977 : f32
    %304 = vector.broadcast %cst_92 : f32 to vector<8x16xf32>
    %305 = arith.mulf %304, %301 : vector<8x16xf32>
    %306 = arith.select %303, %301, %305 : vector<8x16xi1>, vector<8x16xf32>
    %cst_93 = arith.constant dense<0.000000e+00> : vector<8x8xf32>
    %307 = tpu.matmul %306, %28, %cst_93 {dimension_numbers = #tpu.dot_dimension_numbers<[1], [0], [0], [1], [0, 0, 1, 1], [], []>} : vector<8x16xf32>, vector<16x8xf32>, vector<8x8xf32> -> vector<8x8xf32>
    %308 = arith.addf %307, %41 : vector<8x8xf32>
    %cst_94 = arith.constant 0.000000e+00 : f32
    %309 = vector.broadcast %cst_94 : f32 to vector<8x8xf32>
    %310 = arith.cmpf oge, %308, %309 : vector<8x8xf32>
    %cst_95 = arith.constant 0.00999999977 : f32
    %311 = vector.broadcast %cst_95 : f32 to vector<8x8xf32>
    %312 = arith.mulf %311, %308 : vector<8x8xf32>
    %313 = arith.select %310, %308, %312 : vector<8x8xi1>, vector<8x8xf32>
    %cst_96 = arith.constant dense<0.000000e+00> : vector<8x96xf32>
    %314 = tpu.matmul %313, %29, %cst_96 {dimension_numbers = #tpu.dot_dimension_numbers<[1], [0], [0], [1], [0, 0, 1, 1], [], []>} : vector<8x8xf32>, vector<8x96xf32>, vector<8x96xf32> -> vector<8x96xf32>
    %315 = arith.addf %314, %32 : vector<8x96xf32>
    %cst_97 = arith.constant dense<0.000000e+00> : vector<8x96xf32>
    %316 = tpu.matmul %299, %26, %cst_97 {dimension_numbers = #tpu.dot_dimension_numbers<[1], [0], [0], [1], [0, 0, 1, 1], [], []>} : vector<8x32xf32>, vector<32x96xf32>, vector<8x96xf32> -> vector<8x96xf32>
    %317 = vector.extract_strided_slice %315 {offsets = [0, 0], sizes = [8, 64], strides = [1, 1]} : vector<8x96xf32> to vector<8x64xf32>
    %318 = vector.extract_strided_slice %316 {offsets = [0, 0], sizes = [8, 64], strides = [1, 1]} : vector<8x96xf32> to vector<8x64xf32>
    %319 = arith.addf %317, %318 : vector<8x64xf32>
    %320 = arith.negf %319 : vector<8x64xf32>
    %321 = math.exp %320 : vector<8x64xf32>
    %cst_98 = arith.constant 1.000000e+00 : f32
    %322 = vector.broadcast %cst_98 : f32 to vector<8x64xf32>
    %323 = arith.addf %322, %321 : vector<8x64xf32>
    %324 = arith.divf %322, %323 : vector<8x64xf32>
    %325 = vector.extract_strided_slice %324 {offsets = [0, 0], sizes = [8, 32], strides = [1, 1]} : vector<8x64xf32> to vector<8x32xf32>
    %326 = vector.extract_strided_slice %324 {offsets = [0, 32], sizes = [8, 32], strides = [1, 1]} : vector<8x64xf32> to vector<8x32xf32>
    %327 = vector.extract_strided_slice %315 {offsets = [0, 64], sizes = [8, 32], strides = [1, 1]} : vector<8x96xf32> to vector<8x32xf32>
    %328 = vector.extract_strided_slice %316 {offsets = [0, 64], sizes = [8, 32], strides = [1, 1]} : vector<8x96xf32> to vector<8x32xf32>
    %329 = arith.addf %328, %35 : vector<8x32xf32>
    %330 = arith.mulf %325, %329 : vector<8x32xf32>
    %331 = arith.addf %327, %330 : vector<8x32xf32>
    %332 = math.tanh %331 : vector<8x32xf32>
    %cst_99 = arith.constant 1.000000e+00 : f32
    %333 = vector.broadcast %cst_99 : f32 to vector<8x32xf32>
    %334 = arith.subf %333, %326 : vector<8x32xf32>
    %335 = arith.mulf %334, %332 : vector<8x32xf32>
    %336 = arith.mulf %326, %299 : vector<8x32xf32>
    %337 = arith.addf %335, %336 : vector<8x32xf32>
    %cst_100 = arith.constant dense<0.000000e+00> : vector<8x16xf32>
    %338 = tpu.matmul %337, %27, %cst_100 {dimension_numbers = #tpu.dot_dimension_numbers<[1], [0], [0], [1], [0, 0, 1, 1], [], []>} : vector<8x32xf32>, vector<32x16xf32>, vector<8x16xf32> -> vector<8x16xf32>
    %339 = arith.addf %338, %38 : vector<8x16xf32>
    %cst_101 = arith.constant 0.000000e+00 : f32
    %340 = vector.broadcast %cst_101 : f32 to vector<8x16xf32>
    %341 = arith.cmpf oge, %339, %340 : vector<8x16xf32>
    %cst_102 = arith.constant 0.00999999977 : f32
    %342 = vector.broadcast %cst_102 : f32 to vector<8x16xf32>
    %343 = arith.mulf %342, %339 : vector<8x16xf32>
    %344 = arith.select %341, %339, %343 : vector<8x16xi1>, vector<8x16xf32>
    %cst_103 = arith.constant dense<0.000000e+00> : vector<8x8xf32>
    %345 = tpu.matmul %344, %28, %cst_103 {dimension_numbers = #tpu.dot_dimension_numbers<[1], [0], [0], [1], [0, 0, 1, 1], [], []>} : vector<8x16xf32>, vector<16x8xf32>, vector<8x8xf32> -> vector<8x8xf32>
    %346 = arith.addf %345, %41 : vector<8x8xf32>
    %cst_104 = arith.constant 0.000000e+00 : f32
    %347 = vector.broadcast %cst_104 : f32 to vector<8x8xf32>
    %348 = arith.cmpf oge, %346, %347 : vector<8x8xf32>
    %cst_105 = arith.constant 0.00999999977 : f32
    %349 = vector.broadcast %cst_105 : f32 to vector<8x8xf32>
    %350 = arith.mulf %349, %346 : vector<8x8xf32>
    %351 = arith.select %348, %346, %350 : vector<8x8xi1>, vector<8x8xf32>
    %352 = tpu.concatenate %85, %123, %161, %199, %237, %275, %313, %351 in 1 : vector<8x8xf32>, vector<8x8xf32>, vector<8x8xf32>, vector<8x8xf32>, vector<8x8xf32>, vector<8x8xf32>, vector<8x8xf32>, vector<8x8xf32> -> vector<8x64xf32>
    %c272 = arith.constant 272 : index
    %c0_106 = arith.constant 0 : index
    %353 = vector.load %arg3[%c272, %c0_106] : memref<336x128xf32, #tpu.memory_space<vmem>>, vector<64x128xf32>
    %cst_107 = arith.constant dense<0.000000e+00> : vector<8x128xf32>
    %354 = tpu.matmul %352, %353, %cst_107 {dimension_numbers = #tpu.dot_dimension_numbers<[1], [0], [0], [1], [0, 0, 1, 1], [], []>} : vector<8x64xf32>, vector<64x128xf32>, vector<8x128xf32> -> vector<8x128xf32>
    %c0_108 = arith.constant 0 : index
    %c1152 = arith.constant 1152 : index
    %355 = vector.load %arg2[%c0_108, %c1152] : memref<1x1280xf32, #tpu.memory_space<vmem>>, vector<1x128xf32>
    %356 = vector.broadcast %355 : vector<1x128xf32> to vector<8x128xf32>
    %357 = arith.addf %354, %356 : vector<8x128xf32>
    %c0_109 = arith.constant 0 : index
    %c0_110 = arith.constant 0 : index
    %358 = vector.load %arg4[%c0_109, %c0_110] : memref<8x128xf32, #tpu.memory_space<vmem>>, vector<8x128xf32>
    tpu.vector_store %arg4[%c0_109, %c0_110], %357 {strides = array<i32>} : memref<8x128xf32, #tpu.memory_space<vmem>>, vector<8x128xf32>,
    return
  }
}

</mosaic_0001>

<bundles_post_ra>
// kernel: tpu_custom_call.1
= control target key start
LH: loop header
LB: loop body
LE: loop exit
PB: predicated region body
PF: predicated region fallthrough
CT: control target
= control target key end

     0   :  { %9 = vsyncpa [#allocation3], 0  ;;  %s1932_s0 = inlined_call_operand.hbm [shape: f32[8,34], index: 0, kind: input, shape index: {}]   ;;  %s1933_s1 = inlined_call_operand.vmem [shape: f32[8,1], index: 1, kind: input, shape index: {}]   ;;  %s1934_s2 = inlined_call_operand.vmem [shape: f32[1,1280], index: 2, kind: input, shape index: {}]   ;;  %s1935_s3 = inlined_call_operand.hbm [shape: f32[336,128], index: 3, kind: input, shape index: {}]   ;;  %s1936_s4 = inlined_call_operand.hbm [shape: f32[8,128], index: 4, kind: output, shape index: {}]  }
   0x1   :  { %10 = vsyncpa [#allocation6], 0 }
   0x2   :  { %11 = vsyncpa [#allocation4], 0  ;;  %s17_s17 = sshll.u32 %s1932_s0, 4  ;;  %s1584_s18 = smov [#allocation2]   ;;  %s18_s17 = int_to_ptr.hbm [resolvable:$true] %s17_s17 }
   0x3   :  { %s19_s19 = sshll.u32 %s1584_s18, 4  ;;  %s31_s22 = sshll.u32 %s1935_s3, 4  ;;  %s20_s19 = int_to_ptr.vmem [resolvable:$true] %s19_s19  ;;  %s32_s22 = int_to_ptr.hbm [resolvable:$true] %s31_s22 }
   0x4   :  { %22 = dma.hbm_to_vmem [thread:$0]  %s18_s17, 128, %s20_s19, [#allocation3]  }
   0x5   :  { %s1585_s23 = smov [#allocation5]   ;;  %s1586_s25 = smov 128  }
   0x6   :  { %s33_s24 = sshll.u32 %s1585_s23, 4  ;;  %s1587_s26 = smov 8   ;;  %s34_s24 = int_to_ptr.vmem [resolvable:$true] %s33_s24 }
   0x7   :  { %39 = dma.hbm_to_vmem [thread:$0]  %s32_s22, 5376, %s34_s24, [#allocation6], %s1586_s25, %s1586_s25, %s1587_s26  }
   0x8   :  { %1578 = dma.done.wait [#allocation3], 128  }
   0x9   :  { %1579 = vsyncadd [#allocation3], 4294967168 }
   0xa   :  { %1580 = dma.done.wait [#allocation6], 5376  }
   0xb   :  { %1581 = vsyncadd [#allocation6], 4294961920  ;;  %vm62_vm0 = vcmask 1041408   ;;  %v53_v0 = vld [vmem:[#allocation5 + $0x20] sm:$0x3]  ;;  %v52_v1 = vld [vmem:[#allocation5 + $0x18] sm:$0xff] }
   0xc   :  { %vm110_vm1 = vcmask 1043456   ;;  %1387 = vmatpush.msk.msra.mxu0 %vm62_vm0, %v53_v0  ;;  %v51_v2 = vld [vmem:[#allocation5 + $0x10] sm:$0xff]  ;;  %v101_v3 = vld [vmem:[#allocation5 + $0x88] sm:$0xf]  ;;  %v100_v4 = vld [vmem:[#allocation5 + $0x80] sm:$0xff]  ;;  %vm58_vm2 = vcmask 277504  }
   0xd   :  { %1389 = vmatpush.msk.msra.mxu1 %vm110_vm1, %v101_v3  ;;  %v50_v5 = vld [vmem:[#allocation5 + $0x8] sm:$0xff]  ;;  %v49_v6 = vld [vmem:[#allocation5] sm:$0xff]  ;;  %v99_v7 = vld [vmem:[#allocation5 + $0x78] sm:$0xff]  ;;  %vm106_vm4 = vcmask 818176   ;;  %s1588_s5 = smov 64   ;;  %v1589_v39 = vmov 0  }
   0xe   :  { %78 = vmatpush.msra.mxu0 %v52_v1  ;;  %v48_v8 = vld [vmem:[#allocation2] sm:$0xff]  ;;  %v98_v9 = vld [vmem:[#allocation5 + $0x70] sm:$0xff]  ;;  %v97_v10 = vld [vmem:[#allocation5 + $0x68] sm:$0xff]  ;;  %1447 = vset.pattern.permute.xlu0 %v1589_v39  ;;  %vm214_vm6 = vcmask 261120   ;;  %s1590_s13 = smov 96   ;;  %s1591_s14 = smov 32  }
   0xf   :  { %118 = vmatpush.msra.mxu1 %v100_v4  ;;  %v96_v11 = vld [vmem:[#allocation5 + $0x60] sm:$0xff]  ;;  %v95_v12 = vld [vmem:[#allocation5 + $0x58] sm:$0xff]  ;;  %v94_v13 = vld [vmem:[#allocation5 + $0x50] sm:$0xff]  ;;  %vm312_vm12 = vcmask 130048   ;;  %vm339_vm14 = vcmask 64512   ;;  %s1592_s21 = smov 16  }
  0x10   :  { %79 = vmatpush.msra.mxu0 %v51_v2  ;;  %v93_v14 = vld [vmem:[#allocation5 + $0x48] sm:$0xff]  ;;  %v92_v15 = vld [vmem:[#allocation5 + $0x40] sm:$0xff]  ;;  %v91_v16 = vld [vmem:[#allocation5 + $0x38] sm:$0xff]  ;;  %s1593_s22 = smov 40   ;;  %s1594_s23 = smov 24  }
  0x11   :  { %119 = vmatpush.msra.mxu1 %v99_v7  ;;  %v90_v17 = vld [vmem:[#allocation5 + $0x30] sm:$0xff]  ;;  %v89_v18 = vld [vmem:[#allocation5 + $0x28] sm:$0xff]  ;;  %v1448_v21 = vld [vmem:[%s1934_s2] ss:$0 sm:$0xff]  ;;  %s1595_s24 = smov 48   ;;  %s1596_s25 = smov 56  }
  0x12   :  { %80 = vmatpush.msra.mxu0 %v50_v5  ;;  %v141_v19 = vld [vmem:[#allocation5 + $0xb0] sm:$0x3]  ;;  %v140_v20 = vld [vmem:[#allocation5 + $0xa8] sm:$0xff]  ;;  %v139_v26 = vld [vmem:[#allocation5 + $0xa0] sm:$0xff]  ;;  %s1597_s3 = smov [#allocation7]   ;;  %s1376_s30 = sshll.u32 %s1936_s4, 4  ;;  %s1377_s30 = int_to_ptr.hbm [resolvable:$true] %s1376_s30 }
  0x13   :  { %120 = vmatpush.msra.mxu1 %v98_v9  ;;  %1391 = vmatpush.msk.msra.mxu2 %vm62_vm0, %v141_v19  ;;  %v138_v27 = vld [vmem:[#allocation5 + $0x98] sm:$0xff]  ;;  %v137_v28 = vld [vmem:[#allocation5 + $0x90] sm:$0xff]  ;;  %v1638_v30 = vld [vmem:[#allocation5 + $0xc8] sm:$0xff]  ;;  %s1374_s27 = sshll.u32 %s1597_s3, 4  ;;  %s1375_s27 = int_to_ptr.vmem [resolvable:$true] %s1374_s27 }
  0x14   :  { %81 = vmatpush.msra.mxu0 %v49_v6  ;;  %v1636_v29 = vld [vmem:[#allocation5 + $0xd0] sm:$0xff]  ;;  %v1641_v31 = vld [vmem:[#allocation5 + $0xc0] sm:$0xff]  ;;  %v1449_v32 = vld [vmem:[%s1934_s2 + $0x1] ss:$0 sm:$0xff] }
  0x15   :  { %1388 = vmatmul.msk.f32.vlgmr.msra.gmra.mxu0 %vm58_vm2, %v48_v8  ;;  %121 = vmatpush.msra.mxu1 %v97_v10  ;;  %v1451_v37 = vld [vmem:[%s1934_s2 + $0x6] ss:$0 sm:$0xff]  ;;  %v1450_v41 = vld [vmem:[%s1934_s2 + $0x2] ss:$0 sm:$0xff]  ;;  %v1452_v47 = vld [vmem:[%s1934_s2 + $0x3] ss:$0 sm:$0xff] }
  0x16   :  { %164 = vmatpush.msra.mxu2 %v140_v20  ;;  %230 = vmatpush.msrb.mxu0 %v1636_v29  ;;  %v1652_v38 = vld [vmem:[#allocation5 + $0xb8] sm:$0xff]  ;;  %v1676_v7 = vld [vmem:[#allocation5 + $0xf0] sm:$0xff]  ;;  %v1678_v8 = vld [vmem:[#allocation5 + $0xe8] sm:$0xff] }
  0x17   :  { %122 = vmatpush.msra.mxu1 %v96_v11  ;;  %258 = vrot.lane.b32.xlu0 %v1451_v37, %s1588_s5  ;;  %v198_v40 = vld [vmem:[%s1933_s1] sm:$0xff]  ;;  %v1682_v9 = vld [vmem:[#allocation5 + $0xe0] sm:$0xff] }
  0x18   :  { %165 = vmatpush.msra.mxu2 %v139_v26  ;;  %231 = vmatpush.msrb.mxu0 %v1638_v30  ;;  %v1453_v49 = vld [vmem:[%s1934_s2 + $0x4] ss:$0 sm:$0xff]  ;;  %v1719_v20 = vld [vmem:[%s1934_s2 + $0x7] ss:$0 sm:$0xff] }
  0x19   :  { %123 = vmatpush.msra.mxu1 %v95_v12  ;;  %301 = vmatpush.msra.mxu3 %v1676_v7  ;;  %v1686_v10 = vld [vmem:[#allocation5 + $0xd8] sm:$0xff] }
  0x1a   :  { %166 = vmatpush.msra.mxu2 %v138_v27  ;;  %232 = vmatpush.msrb.mxu0 %v1641_v31  ;;  %v1709_v19 = vld [vmem:[#allocation5 + $0xf8] sm:$0xff]  ;;  %v1729_v27 = vld [vmem:[#allocation5 + $0x108] sm:$0xff] }
  0x1b   :  { %124 = vmatpush.msra.mxu1 %v94_v13  ;;  %302 = vmatpush.msra.mxu3 %v1678_v8 }
  0x1c   :  { %167 = vmatpush.msra.mxu2 %v137_v28  ;;  %233 = vmatpush.msrb.mxu0 %v1652_v38  ;;  %v1739_v28 = vld [vmem:[%s1934_s2 + $0x8] ss:$0 sm:$0xff] }
  0x1d   :  { %125 = vmatpush.msra.mxu1 %v93_v14  ;;  %303 = vmatpush.msra.mxu3 %v1682_v9 }
  0x1e   :  { %358 = vmatpush.msrb.mxu2 %v1729_v27 }
  0x1f   :  { %126 = vmatpush.msra.mxu1 %v92_v15  ;;  %202 = vperm.xlu0 %1447, %v198_v40  }
  0x20   :  { %304 = vmatpush.msra.mxu3 %v1686_v10 }
  0x21   :  { %127 = vmatpush.msra.mxu1 %v91_v16 }
  0x22   :  { %375 = vmatpush.msrb.mxu3 %v1636_v29 }
  0x23   :  { %128 = vmatpush.msra.mxu1 %v90_v17  ;;  %v1704_v17 = vld [vmem:[#allocation5 + $0x100] sm:$0xff] }
  0x24   :  { %376 = vmatpush.msrb.mxu3 %v1638_v30  ;;  %330 = vmatpush.msra.mxu0 %v1704_v17 }
  0x25   :  { %129 = vmatpush.msra.mxu1 %v89_v18 }
  0x26   :  { %377 = vmatpush.msrb.mxu3 %v1641_v31  ;;  %331 = vmatpush.msra.mxu0 %v1709_v19 }
  0x27   :  { %577 = vmatpush.msrb.mxu1 %v1676_v7 }
  0x28   :  { %378 = vmatpush.msrb.mxu3 %v1652_v38 }
  0x29   :  { %578 = vmatpush.msrb.mxu1 %v1678_v8 }
  0x2b   :  { %579 = vmatpush.msrb.mxu1 %v1682_v9 }
  0x2d   :  { %580 = vmatpush.msrb.mxu1 %v1686_v10 }
  0x89   :  { %v1663_v44 = vpop.permute.xlu0 %258 }
  0x91   :  { %v203_v48 = vpop.permute.xlu0 %202 }
  0x92   :  { %v83_v22 = vpop.f32.mrf.mxu0  ;;  %v208_v50 = vmul.f32 %v1452_v47, %v203_v48 }
  0x93   :  { %v84_v23 = vadd.f32 %v1448_v21, %v83_v22 }
  0x94   :  { %v213_v51 = vadd.f32 %v1453_v49, %v208_v50 }
  0x95   :  { %v87_v24 = vmul.f32 0.01, %v84_v23  ;;  %vm86_vm3 = vcmp.ge.f32.partialorder %v84_v23, 0.0 }
  0x97   :  { %v88_v25 = vsel %vm86_vm3, %v84_v23, %v87_v24 }
  0x98   :  { %1390 = vmatmul.msk.f32.vlgmr.msra.gmra.mxu1 %vm106_vm4, %v88_v25 }
  0x99   :  { %714 = vmatpush.msra.mxu1 %v1676_v7 }
  0x9b   :  { %715 = vmatpush.msra.mxu1 %v1678_v8 }
  0x9d   :  { %716 = vmatpush.msra.mxu1 %v1682_v9 }
  0x9f   :  { %717 = vmatpush.msra.mxu1 %v1686_v10 }
 0x115   :  { %v131_v33 = vpop.f32.mrf.mxu1 }
 0x116   :  { %v132_v34 = vadd.f32 %v1449_v32, %v131_v33 }
 0x118   :  { %v135_v35 = vmul.f32 0.01, %v132_v34  ;;  %vm134_vm5 = vcmp.ge.f32.partialorder %v132_v34, 0.0 }
 0x11a   :  { %v136_v36 = vsel %vm134_vm5, %v132_v34, %v135_v35 }
 0x11b   :  { %1392 = vmatmul.msk.f32.vlgmr.msra.gmra.mxu2 %vm58_vm2, %v136_v36  ;;  %v1751_v36 = vld [vmem:[%s1934_s2 + $0x5] ss:$0 sm:$0xff] }
 0x11c   :  { %468 = vmatpush.msra.mxu2 %v1704_v17 }
 0x11e   :  { %469 = vmatpush.msra.mxu2 %v1709_v19 }
 0x19e   :  { %v169_v42 = vpop.f32.mrf.mxu2 }
 0x19f   :  { %v170_v43 = vadd.f32 %v1450_v41, %v169_v42 }
 0x1a1   :  { %1393 = vmatmul.msk.f32.vlgmr.msrb.gmra.mxu0 %vm214_vm6, %v170_v43 }
 0x1a2   :  { %440 = vmatpush.msrb.mxu0 %v1676_v7 }
 0x1a4   :  { %441 = vmatpush.msrb.mxu0 %v1678_v8 }
 0x1a6   :  { %442 = vmatpush.msrb.mxu0 %v1682_v9 }
 0x1a8   :  { %443 = vmatpush.msrb.mxu0 %v1686_v10 }
 0x21e   :  { %v235_v45 = vpop.f32.mrf.mxu0 }
 0x21f   :  { %v261_v46 = vadd.f32 %v1663_v44, %v235_v45  ;;  %v238_v52 = vadd.f32 %v235_v45, %v213_v51 }
 0x221   :  { %263 = vrot.lane.b32.xlu1 %v261_v46, %s1588_s5  ;;  %v1394_v53 = vmul.f32 -1.442695, %v238_v52 }
 0x223   :  { %1458 = vpow2.f32 %v1394_v53 }
 0x229   :  { %v1459_v54 = vpop.eup %1458 }
 0x22a   :  { %v242_v55 = vadd.f32 1.0, %v1459_v54 }
 0x22c   :  { %1460 = vrcp.f32 %v242_v55  ;;  %v254_v61 = vand.u32 2147483648, %v242_v55  ;;  %vm248_vm8 = vweird.f32 %v242_v55  ;;  %v252_v62 = vand.u32 2147483647, %v242_v55 }
 0x22e   :  { %v255_v0 = vor.u32 1.1754944e-38, %v254_v61  ;;  %vm253_vm10 = vcmp.eq.f32.partialorder %v252_v62, 8.507059e+37 }
 0x232   :  { %v1461_v56 = vpop.eup %1460 }
 0x233   :  { %v244_v57 = vmul.f32 %v1461_v56, %v242_v55  ;;  %vm249_vm7 = vweird.f32 %v1461_v56 }
 0x234   :  { %vm250_vm9 = vmor %vm248_vm8, %vm249_vm7 }
 0x235   :  { %v245_v58 = vsub.f32 1.0, %v244_v57 }
 0x237   :  { %v246_v59 = vmul.f32 %v1461_v56, %v245_v58 }
 0x239   :  { %v247_v60 = vadd.f32 %v1461_v56, %v246_v59 }
 0x23b   :  { %v251_v63 = vsel %vm250_vm9, %v1461_v56, %v247_v60 }
 0x23c   :  { %v256_v2 = vsel %vm253_vm10, %v255_v0, %v251_v63 }
 0x23d   :  { %v273_v12 = vsub.f32 1.0, %v256_v2 }
 0x293   :  { %v264_v1 = vpop.permute.xlu1 %263 }
 0x294   :  { %v266_v3 = vmul.f32 %v264_v1, %v256_v2 }
 0x296   :  { %268 = vrot.lane.b32.xlu1 %v266_v3, %s1588_s5 }
 0x308   :  { %v269_v4 = vpop.permute.xlu1 %268 }
 0x309   :  { %v271_v5 = vadd.f32 %v269_v4, %v213_v51 }
 0x30b   :  { %1462 = vtanh.f32 %v271_v5 }
 0x311   :  { %v1463_v6 = vpop.eup %1462 }
 0x312   :  { %275 = vrot.lane.b32.xlu2 %v1463_v6, %s1590_s13 }
 0x31a   :  { %279 = vrot.lane.b32.xlu2 %v170_v43, %s1591_s14 }
 0x36c   :  { %v276_v11 = vpop.permute.xlu2 %275 }
 0x36d   :  { %v278_v14 = vmul.f32 %v276_v11, %v273_v12 }
 0x374   :  { %v280_v13 = vpop.permute.xlu2 %279 }
 0x375   :  { %v282_v15 = vmul.f32 %v280_v13, %v256_v2 }
 0x377   :  { %v1700_v16 = vadd.f32 %v282_v15, %v278_v14 }
 0x379   :  { %285 = vrot.lane.b32.xlu1 %v1700_v16, %s1590_s13 }
 0x3eb   :  { %v286_v18 = vpop.permute.xlu1 %285 }
 0x3ec   :  { %1395 = vmatmul.msk.f32.vlgmr.msra.gmra.mxu3 %vm214_vm6, %v286_v18 }
 0x3ed   :  { %495 = vmatpush.msra.mxu3 %v1729_v27 }
 0x3f4   :  { %1398 = vmatmul.msk.f32.vlgmr.msrb.gmra.mxu3 %vm214_vm6, %v286_v18 }
 0x3f5   :  { %632 = vmatpush.msrb.mxu3 %v1729_v27 }
 0x46f   :  { %v306_v21 = vpop.f32.mrf.mxu3 }
 0x470   :  { %v307_v22 = vadd.f32 %v1719_v20, %v306_v21 }
 0x472   :  { %vm309_vm11 = vcmp.ge.f32.partialorder %v307_v22, 0.0  ;;  %v310_v23 = vmul.f32 0.01, %v307_v22 }
 0x474   :  { %v311_v24 = vsel %vm309_vm11, %v307_v22, %v310_v23 }
 0x475   :  { %1396 = vmatmul.msk.f32.vlgmr.msra.gmra.mxu0 %vm312_vm12, %v311_v24 }
 0x476   :  { %512 = vmatpush.msra.mxu0 %v1636_v29 }
 0x477   :  { %v380_v25 = vpop.f32.mrf.mxu3 }
 0x478   :  { %v403_v26 = vadd.f32 %v380_v25, %v1663_v44  ;;  %513 = vmatpush.msra.mxu0 %v1638_v30 }
 0x47a   :  { %405 = vrot.lane.b32.xlu2 %v403_v26, %s1588_s5  ;;  %514 = vmatpush.msra.mxu0 %v1641_v31 }
 0x47c   :  { %515 = vmatpush.msra.mxu0 %v1652_v38 }
 0x4d4   :  { %v406_v54 = vpop.permute.xlu2 %405 }
 0x4f2   :  { %v333_v32 = vpop.f32.mrf.mxu0 }
 0x4f3   :  { %v334_v33 = vadd.f32 %v1739_v28, %v333_v32 }
 0x4f5   :  { %vm336_vm13 = vcmp.ge.f32.partialorder %v334_v33, 0.0  ;;  %v337_v34 = vmul.f32 0.01, %v334_v33 }
 0x4f7   :  { %v1742_v35 = vsel %vm336_vm13, %v334_v33, %v337_v34 }
 0x4f8   :  { %1397 = vmatmul.msk.f32.vlgmr.msrb.gmra.mxu2 %vm339_vm14, %v1742_v35 }
 0x4f9   :  { %605 = vmatpush.msrb.mxu2 %v1704_v17 }
 0x4fb   :  { %606 = vmatpush.msrb.mxu2 %v1709_v19 }
 0x57b   :  { %v360_v37 = vpop.f32.mrf.mxu2 }
 0x57c   :  { %v361_v39 = vadd.f32 %v1751_v36, %v360_v37 }
 0x57e   :  { %v383_v40 = vadd.f32 %v380_v25, %v361_v39 }
 0x580   :  { %v1399_v41 = vmul.f32 -1.442695, %v383_v40 }
 0x582   :  { %1464 = vpow2.f32 %v1399_v41 }
 0x588   :  { %v1465_v42 = vpop.eup %1464 }
 0x589   :  { %v387_v43 = vadd.f32 1.0, %v1465_v42 }
 0x58b   :  { %1466 = vrcp.f32 %v387_v43  ;;  %v399_v48 = vand.u32 2147483648, %v387_v43  ;;  %v397_v50 = vand.u32 2147483647, %v387_v43  ;;  %vm393_vm0 = vweird.f32 %v387_v43 }
 0x58d   :  { %v400_v52 = vor.u32 1.1754944e-38, %v399_v48  ;;  %vm398_vm2 = vcmp.eq.f32.partialorder %v397_v50, 8.507059e+37 }
 0x591   :  { %v1467_v45 = vpop.eup %1466 }
 0x592   :  { %v389_v46 = vmul.f32 %v1467_v45, %v387_v43  ;;  %vm394_vm15 = vweird.f32 %v1467_v45 }
 0x593   :  { %vm395_vm1 = vmor %vm393_vm0, %vm394_vm15 }
 0x594   :  { %v390_v47 = vsub.f32 1.0, %v389_v46 }
 0x596   :  { %v391_v49 = vmul.f32 %v1467_v45, %v390_v47 }
 0x598   :  { %v392_v51 = vadd.f32 %v1467_v45, %v391_v49 }
 0x59a   :  { %v396_v53 = vsel %vm395_vm1, %v1467_v45, %v392_v51 }
 0x59b   :  { %v401_v55 = vsel %vm398_vm2, %v400_v52, %v396_v53 }
 0x59c   :  { %v408_v56 = vmul.f32 %v406_v54, %v401_v55  ;;  %v415_v60 = vsub.f32 1.0, %v401_v55  ;;  %v421_v62 = vmul.f32 %v401_v55, %v1700_v16 }
 0x59e   :  { %410 = vrot.lane.b32.xlu0 %v408_v56, %s1588_s5 }
 0x610   :  { %v411_v57 = vpop.permute.xlu0 %410 }
 0x611   :  { %v413_v58 = vadd.f32 %v411_v57, %v361_v39 }
 0x613   :  { %1468 = vtanh.f32 %v413_v58 }
 0x619   :  { %v1469_v59 = vpop.eup %1468 }
 0x61a   :  { %417 = vrot.lane.b32.xlu1 %v1469_v59, %s1590_s13 }
 0x68c   :  { %v418_v61 = vpop.permute.xlu1 %417 }
 0x68d   :  { %v420_v63 = vmul.f32 %v418_v61, %v415_v60 }
 0x68f   :  { %v1757_v0 = vadd.f32 %v421_v62, %v420_v63 }
 0x691   :  { %424 = vrot.lane.b32.xlu2 %v1757_v0, %s1590_s13 }
 0x6eb   :  { %v425_v1 = vpop.permute.xlu2 %424 }
 0x6ec   :  { %1400 = vmatmul.msk.f32.vlgmr.msrb.gmra.mxu0 %vm214_vm6, %v425_v1 }
 0x6ed   :  { %649 = vmatpush.msrb.mxu0 %v1636_v29 }
 0x6ef   :  { %650 = vmatpush.msrb.mxu0 %v1638_v30 }
 0x6f1   :  { %651 = vmatpush.msrb.mxu0 %v1641_v31 }
 0x6f3   :  { %652 = vmatpush.msrb.mxu0 %v1652_v38 }
 0x6f4   :  { %1403 = vmatmul.msk.f32.vlgmr.msra.gmra.mxu0 %vm214_vm6, %v425_v1 }
 0x6f5   :  { %786 = vmatpush.msra.mxu0 %v1636_v29 }
 0x6f7   :  { %787 = vmatpush.msra.mxu0 %v1638_v30 }
 0x6f9   :  { %788 = vmatpush.msra.mxu0 %v1641_v31 }
 0x6fb   :  { %789 = vmatpush.msra.mxu0 %v1652_v38 }
 0x769   :  { %v445_v2 = vpop.f32.mrf.mxu0 }
 0x76a   :  { %v446_v3 = vadd.f32 %v1719_v20, %v445_v2 }
 0x76c   :  { %vm448_vm3 = vcmp.ge.f32.partialorder %v446_v3, 0.0  ;;  %v449_v4 = vmul.f32 0.01, %v446_v3 }
 0x76e   :  { %v450_v5 = vsel %vm448_vm3, %v446_v3, %v449_v4 }
 0x76f   :  { %1401 = vmatmul.msk.f32.vlgmr.msra.gmra.mxu2 %vm312_vm12, %v450_v5 }
 0x770   :  { %742 = vmatpush.msra.mxu2 %v1704_v17 }
 0x771   :  { %v517_v6 = vpop.f32.mrf.mxu0 }
 0x772   :  { %v540_v11 = vadd.f32 %v517_v6, %v1663_v44  ;;  %743 = vmatpush.msra.mxu2 %v1709_v19 }
 0x774   :  { %542 = vrot.lane.b32.xlu0 %v540_v11, %s1588_s5 }
 0x7e6   :  { %v543_v42 = vpop.permute.xlu0 %542 }
 0x7f2   :  { %v471_v12 = vpop.f32.mrf.mxu2 }
 0x7f3   :  { %v472_v13 = vadd.f32 %v1739_v28, %v471_v12 }
 0x7f5   :  { %vm474_vm4 = vcmp.ge.f32.partialorder %v472_v13, 0.0  ;;  %v475_v14 = vmul.f32 0.01, %v472_v13 }
 0x7f7   :  { %v1778_v15 = vsel %vm474_vm4, %v472_v13, %v475_v14 }
 0x7f8   :  { %1402 = vmatmul.msk.f32.vlgmr.msra.gmra.mxu3 %vm339_vm14, %v1778_v15 }
 0x7f9   :  { %769 = vmatpush.msra.mxu3 %v1729_v27 }
 0x87b   :  { %v497_v16 = vpop.f32.mrf.mxu3 }
 0x87c   :  { %v498_v18 = vadd.f32 %v1751_v36, %v497_v16 }
 0x87e   :  { %v520_v21 = vadd.f32 %v517_v6, %v498_v18 }
 0x880   :  { %v1404_v22 = vmul.f32 -1.442695, %v520_v21 }
 0x882   :  { %1470 = vpow2.f32 %v1404_v22 }
 0x888   :  { %v1471_v23 = vpop.eup %1470 }
 0x889   :  { %v524_v24 = vadd.f32 1.0, %v1471_v23 }
 0x88b   :  { %1472 = vrcp.f32 %v524_v24  ;;  %v536_v33 = vand.u32 2147483648, %v524_v24  ;;  %v534_v37 = vand.u32 2147483647, %v524_v24  ;;  %vm530_vm7 = vweird.f32 %v524_v24 }
 0x88d   :  { %v537_v40 = vor.u32 1.1754944e-38, %v536_v33  ;;  %vm535_vm9 = vcmp.eq.f32.partialorder %v534_v37, 8.507059e+37 }
 0x891   :  { %v1473_v25 = vpop.eup %1472 }
 0x892   :  { %v526_v26 = vmul.f32 %v1473_v25, %v524_v24  ;;  %vm531_vm5 = vweird.f32 %v1473_v25 }
 0x893   :  { %vm532_vm8 = vmor %vm530_vm7, %vm531_vm5 }
 0x894   :  { %v527_v32 = vsub.f32 1.0, %v526_v26 }
 0x896   :  { %v528_v34 = vmul.f32 %v1473_v25, %v527_v32 }
 0x898   :  { %v529_v39 = vadd.f32 %v1473_v25, %v528_v34 }
 0x89a   :  { %v533_v41 = vsel %vm532_vm8, %v1473_v25, %v529_v39 }
 0x89b   :  { %v538_v43 = vsel %vm535_vm9, %v537_v40, %v533_v41 }
 0x89c   :  { %v545_v45 = vmul.f32 %v543_v42, %v538_v43  ;;  %v552_v49 = vsub.f32 1.0, %v538_v43  ;;  %v558_v51 = vmul.f32 %v538_v43, %v1757_v0 }
 0x89e   :  { %547 = vrot.lane.b32.xlu1 %v545_v45, %s1588_s5 }
 0x910   :  { %v548_v46 = vpop.permute.xlu1 %547 }
 0x911   :  { %v550_v47 = vadd.f32 %v548_v46, %v498_v18 }
 0x913   :  { %1474 = vtanh.f32 %v550_v47 }
 0x919   :  { %v1475_v48 = vpop.eup %1474 }
 0x91a   :  { %554 = vrot.lane.b32.xlu2 %v1475_v48, %s1590_s13 }
 0x974   :  { %v555_v50 = vpop.permute.xlu2 %554 }
 0x975   :  { %v557_v52 = vmul.f32 %v555_v50, %v552_v49 }
 0x977   :  { %v1787_v53 = vadd.f32 %v558_v51, %v557_v52 }
 0x979   :  { %561 = vrot.lane.b32.xlu0 %v1787_v53, %s1590_s13 }
 0x9eb   :  { %v562_v54 = vpop.permute.xlu0 %561 }
 0x9ec   :  { %1405 = vmatmul.msk.f32.vlgmr.msrb.gmra.mxu1 %vm214_vm6, %v562_v54  ;;  %1408 = vmatmul.msk.f32.vlgmr.msrb.gmra.mxu0 %vm214_vm6, %v562_v54 }
 0x9ed   :  { %851 = vmatpush.msrb.mxu1 %v1676_v7  ;;  %923 = vmatpush.msrb.mxu0 %v1636_v29 }
 0x9ef   :  { %852 = vmatpush.msrb.mxu1 %v1678_v8  ;;  %924 = vmatpush.msrb.mxu0 %v1638_v30 }
 0x9f1   :  { %853 = vmatpush.msrb.mxu1 %v1682_v9  ;;  %925 = vmatpush.msrb.mxu0 %v1641_v31 }
 0x9f3   :  { %854 = vmatpush.msrb.mxu1 %v1686_v10  ;;  %926 = vmatpush.msrb.mxu0 %v1652_v38 }
 0xa69   :  { %v582_v55 = vpop.f32.mrf.mxu1  ;;  %v654_v56 = vpop.f32.mrf.mxu0 }
 0xa6a   :  { %v583_v57 = vadd.f32 %v1719_v20, %v582_v55  ;;  %v677_v58 = vadd.f32 %v654_v56, %v1663_v44 }
 0xa6c   :  { %vm585_vm10 = vcmp.ge.f32.partialorder %v583_v57, 0.0  ;;  %v586_v59 = vmul.f32 0.01, %v583_v57  ;;  %679 = vrot.lane.b32.xlu1 %v677_v58, %s1588_s5 }
 0xa6e   :  { %v587_v60 = vsel %vm585_vm10, %v583_v57, %v586_v59 }
 0xa6f   :  { %1406 = vmatmul.msk.f32.vlgmr.msrb.gmra.mxu2 %vm312_vm12, %v587_v60 }
 0xa70   :  { %879 = vmatpush.msrb.mxu2 %v1704_v17 }
 0xa72   :  { %880 = vmatpush.msrb.mxu2 %v1709_v19 }
 0xade   :  { %v680_v24 = vpop.permute.xlu1 %679 }
 0xaf2   :  { %v608_v61 = vpop.f32.mrf.mxu2 }
 0xaf3   :  { %v609_v62 = vadd.f32 %v1739_v28, %v608_v61 }
 0xaf5   :  { %vm611_vm11 = vcmp.ge.f32.partialorder %v609_v62, 0.0  ;;  %v612_v63 = vmul.f32 0.01, %v609_v62 }
 0xaf7   :  { %v1808_v0 = vsel %vm611_vm11, %v609_v62, %v612_v63 }
 0xaf8   :  { %1407 = vmatmul.msk.f32.vlgmr.msrb.gmra.mxu3 %vm339_vm14, %v1808_v0 }
 0xaf9   :  { %906 = vmatpush.msrb.mxu3 %v1729_v27 }
 0xb7b   :  { %v634_v1 = vpop.f32.mrf.mxu3 }
 0xb7c   :  { %v635_v2 = vadd.f32 %v1751_v36, %v634_v1 }
 0xb7e   :  { %v657_v3 = vadd.f32 %v654_v56, %v635_v2 }
 0xb80   :  { %v1409_v4 = vmul.f32 -1.442695, %v657_v3 }
 0xb82   :  { %1476 = vpow2.f32 %v1409_v4 }
 0xb88   :  { %v1477_v5 = vpop.eup %1476 }
 0xb89   :  { %v661_v6 = vadd.f32 1.0, %v1477_v5 }
 0xb8b   :  { %1478 = vrcp.f32 %v661_v6  ;;  %v673_v14 = vand.u32 2147483648, %v661_v6  ;;  %v671_v18 = vand.u32 2147483647, %v661_v6  ;;  %vm667_vm15 = vweird.f32 %v661_v6 }
 0xb8d   :  { %v674_v22 = vor.u32 1.1754944e-38, %v673_v14  ;;  %vm672_vm1 = vcmp.eq.f32.partialorder %v671_v18, 8.507059e+37 }
 0xb91   :  { %v1479_v11 = vpop.eup %1478 }
 0xb92   :  { %v663_v12 = vmul.f32 %v1479_v11, %v661_v6  ;;  %vm668_vm13 = vweird.f32 %v1479_v11 }
 0xb93   :  { %vm669_vm0 = vmor %vm667_vm15, %vm668_vm13 }
 0xb94   :  { %v664_v13 = vsub.f32 1.0, %v663_v12 }
 0xb96   :  { %v665_v16 = vmul.f32 %v1479_v11, %v664_v13 }
 0xb98   :  { %v666_v21 = vadd.f32 %v1479_v11, %v665_v16 }
 0xb9a   :  { %v670_v23 = vsel %vm669_vm0, %v1479_v11, %v666_v21 }
 0xb9b   :  { %v675_v25 = vsel %vm672_vm1, %v674_v22, %v670_v23 }
 0xb9c   :  { %v682_v26 = vmul.f32 %v680_v24, %v675_v25  ;;  %v689_v37 = vsub.f32 1.0, %v675_v25  ;;  %v695_v40 = vmul.f32 %v675_v25, %v1787_v53 }
 0xb9e   :  { %684 = vrot.lane.b32.xlu2 %v682_v26, %s1588_s5 }
 0xbf8   :  { %v685_v32 = vpop.permute.xlu2 %684 }
 0xbf9   :  { %v687_v33 = vadd.f32 %v685_v32, %v635_v2 }
 0xbfb   :  { %1480 = vtanh.f32 %v687_v33 }
 0xc01   :  { %v1481_v34 = vpop.eup %1480 }
 0xc02   :  { %691 = vrot.lane.b32.xlu0 %v1481_v34, %s1590_s13 }
 0xc74   :  { %v692_v39 = vpop.permute.xlu0 %691 }
 0xc75   :  { %v694_v41 = vmul.f32 %v692_v39, %v689_v37 }
 0xc77   :  { %v1817_v42 = vadd.f32 %v695_v40, %v694_v41 }
 0xc79   :  { %698 = vrot.lane.b32.xlu1 %v1817_v42, %s1590_s13 }
 0xceb   :  { %v699_v43 = vpop.permute.xlu1 %698 }
 0xcec   :  { %1410 = vmatmul.msk.f32.vlgmr.msra.gmra.mxu1 %vm214_vm6, %v699_v43  ;;  %1413 = vmatmul.msk.f32.vlgmr.msra.gmra.mxu0 %vm214_vm6, %v699_v43 }
 0xced   :  { %988 = vmatpush.msra.mxu1 %v1676_v7  ;;  %1060 = vmatpush.msra.mxu0 %v1636_v29 }
 0xcef   :  { %989 = vmatpush.msra.mxu1 %v1678_v8  ;;  %1061 = vmatpush.msra.mxu0 %v1638_v30 }
 0xcf1   :  { %990 = vmatpush.msra.mxu1 %v1682_v9  ;;  %1062 = vmatpush.msra.mxu0 %v1641_v31 }
 0xcf3   :  { %991 = vmatpush.msra.mxu1 %v1686_v10  ;;  %1063 = vmatpush.msra.mxu0 %v1652_v38 }
 0xd69   :  { %v719_v45 = vpop.f32.mrf.mxu1  ;;  %v791_v46 = vpop.f32.mrf.mxu0 }
 0xd6a   :  { %v720_v47 = vadd.f32 %v1719_v20, %v719_v45  ;;  %v814_v48 = vadd.f32 %v791_v46, %v1663_v44 }
 0xd6c   :  { %vm722_vm2 = vcmp.ge.f32.partialorder %v720_v47, 0.0  ;;  %v723_v49 = vmul.f32 0.01, %v720_v47  ;;  %816 = vrot.lane.b32.xlu2 %v814_v48, %s1588_s5 }
 0xd6e   :  { %v724_v50 = vsel %vm722_vm2, %v720_v47, %v723_v49 }
 0xd6f   :  { %1411 = vmatmul.msk.f32.vlgmr.msra.gmra.mxu2 %vm312_vm12, %v724_v50 }
 0xd70   :  { %1016 = vmatpush.msra.mxu2 %v1704_v17 }
 0xd72   :  { %1017 = vmatpush.msra.mxu2 %v1709_v19 }
 0xdc6   :  { %v817_v11 = vpop.permute.xlu2 %816 }
 0xdf2   :  { %v745_v51 = vpop.f32.mrf.mxu2 }
 0xdf3   :  { %v746_v52 = vadd.f32 %v1739_v28, %v745_v51 }
 0xdf5   :  { %vm748_vm3 = vcmp.ge.f32.partialorder %v746_v52, 0.0  ;;  %v749_v53 = vmul.f32 0.01, %v746_v52 }
 0xdf7   :  { %v1838_v54 = vsel %vm748_vm3, %v746_v52, %v749_v53 }
 0xdf8   :  { %1412 = vmatmul.msk.f32.vlgmr.msra.gmra.mxu3 %vm339_vm14, %v1838_v54 }
 0xdf9   :  { %1043 = vmatpush.msra.mxu3 %v1729_v27 }
 0xe7b   :  { %v771_v55 = vpop.f32.mrf.mxu3 }
 0xe7c   :  { %v772_v56 = vadd.f32 %v1751_v36, %v771_v55 }
 0xe7e   :  { %v794_v57 = vadd.f32 %v791_v46, %v772_v56 }
 0xe80   :  { %v1414_v58 = vmul.f32 -1.442695, %v794_v57 }
 0xe82   :  { %1482 = vpow2.f32 %v1414_v58 }
 0xe88   :  { %v1483_v59 = vpop.eup %1482 }
 0xe89   :  { %v798_v60 = vadd.f32 1.0, %v1483_v59 }
 0xe8b   :  { %1484 = vrcp.f32 %v798_v60  ;;  %v810_v1 = vand.u32 2147483648, %v798_v60  ;;  %v808_v3 = vand.u32 2147483647, %v798_v60  ;;  %vm804_vm5 = vweird.f32 %v798_v60 }
 0xe8d   :  { %v811_v5 = vor.u32 1.1754944e-38, %v810_v1  ;;  %vm809_vm8 = vcmp.eq.f32.partialorder %v808_v3, 8.507059e+37 }
 0xe91   :  { %v1485_v61 = vpop.eup %1484 }
 0xe92   :  { %v800_v62 = vmul.f32 %v1485_v61, %v798_v60  ;;  %vm805_vm4 = vweird.f32 %v1485_v61 }
 0xe93   :  { %vm806_vm7 = vmor %vm804_vm5, %vm805_vm4 }
 0xe94   :  { %v801_v63 = vsub.f32 1.0, %v800_v62 }
 0xe96   :  { %v802_v2 = vmul.f32 %v1485_v61, %v801_v63 }
 0xe98   :  { %v803_v4 = vadd.f32 %v1485_v61, %v802_v2 }
 0xe9a   :  { %v807_v6 = vsel %vm806_vm7, %v1485_v61, %v803_v4 }
 0xe9b   :  { %v812_v12 = vsel %vm809_vm8, %v811_v5, %v807_v6 }
 0xe9c   :  { %v819_v13 = vmul.f32 %v817_v11, %v812_v12  ;;  %v826_v21 = vsub.f32 1.0, %v812_v12  ;;  %v832_v23 = vmul.f32 %v812_v12, %v1817_v42 }
 0xe9e   :  { %821 = vrot.lane.b32.xlu0 %v819_v13, %s1588_s5 }
 0xf10   :  { %v822_v14 = vpop.permute.xlu0 %821 }
 0xf11   :  { %v824_v16 = vadd.f32 %v822_v14, %v772_v56 }
 0xf13   :  { %1486 = vtanh.f32 %v824_v16 }
 0xf19   :  { %v1487_v18 = vpop.eup %1486 }
 0xf1a   :  { %828 = vrot.lane.b32.xlu1 %v1487_v18, %s1590_s13 }
 0xf8c   :  { %v829_v22 = vpop.permute.xlu1 %828 }
 0xf8d   :  { %v831_v24 = vmul.f32 %v829_v22, %v826_v21 }
 0xf8f   :  { %v1847_v25 = vadd.f32 %v832_v23, %v831_v24 }
 0xf91   :  { %835 = vrot.lane.b32.xlu2 %v1847_v25, %s1590_s13 }
 0xfeb   :  { %v836_v26 = vpop.permute.xlu2 %835 }
 0xfec   :  { %1415 = vmatmul.msk.f32.vlgmr.msrb.gmra.mxu1 %vm214_vm6, %v836_v26  ;;  %1418 = vmatmul.msk.f32.vlgmr.msrb.gmra.mxu0 %vm214_vm6, %v836_v26 }
 0xfed   :  { %1125 = vmatpush.msrb.mxu1 %v1676_v7  ;;  %1197 = vmatpush.msrb.mxu0 %v1636_v29 }
 0xfef   :  { %1126 = vmatpush.msrb.mxu1 %v1678_v8  ;;  %1198 = vmatpush.msrb.mxu0 %v1638_v30 }
 0xff1   :  { %1127 = vmatpush.msrb.mxu1 %v1682_v9  ;;  %1199 = vmatpush.msrb.mxu0 %v1641_v31 }
 0xff3   :  { %1128 = vmatpush.msrb.mxu1 %v1686_v10  ;;  %1200 = vmatpush.msrb.mxu0 %v1652_v38 }
0x1069   :  { %v856_v32 = vpop.f32.mrf.mxu1  ;;  %v928_v33 = vpop.f32.mrf.mxu0 }
0x106a   :  { %v857_v34 = vadd.f32 %v1719_v20, %v856_v32  ;;  %v951_v37 = vadd.f32 %v928_v33, %v1663_v44 }
0x106c   :  { %vm859_vm9 = vcmp.ge.f32.partialorder %v857_v34, 0.0  ;;  %v860_v29 = vmul.f32 0.01, %v857_v34  ;;  %953 = vrot.lane.b32.xlu0 %v951_v37, %s1588_s5 }
0x106e   :  { %v861_v39 = vsel %vm859_vm9, %v857_v34, %v860_v29 }
0x106f   :  { %1416 = vmatmul.msk.f32.vlgmr.msrb.gmra.mxu2 %vm312_vm12, %v861_v39 }
0x1070   :  { %1153 = vmatpush.msrb.mxu2 %v1704_v17 }
0x1072   :  { %1154 = vmatpush.msrb.mxu2 %v1709_v19 }
0x10de   :  { %v954_v57 = vpop.permute.xlu0 %953 }
0x10f2   :  { %v882_v30 = vpop.f32.mrf.mxu2 }
0x10f3   :  { %v883_v31 = vadd.f32 %v1739_v28, %v882_v30 }
0x10f5   :  { %vm885_vm10 = vcmp.ge.f32.partialorder %v883_v31, 0.0  ;;  %v886_v38 = vmul.f32 0.01, %v883_v31 }
0x10f7   :  { %v1868_v40 = vsel %vm885_vm10, %v883_v31, %v886_v38 }
0x10f8   :  { %1417 = vmatmul.msk.f32.vlgmr.msrb.gmra.mxu3 %vm339_vm14, %v1868_v40 }
0x10f9   :  { %1180 = vmatpush.msrb.mxu3 %v1729_v27 }
0x117b   :  { %v908_v41 = vpop.f32.mrf.mxu3 }
0x117c   :  { %v909_v42 = vadd.f32 %v1751_v36, %v908_v41 }
0x117e   :  { %v931_v43 = vadd.f32 %v928_v33, %v909_v42 }
0x1180   :  { %v1419_v45 = vmul.f32 -1.442695, %v931_v43 }
0x1182   :  { %1488 = vpow2.f32 %v1419_v45 }
0x1188   :  { %v1489_v46 = vpop.eup %1488 }
0x1189   :  { %v935_v47 = vadd.f32 1.0, %v1489_v46 }
0x118b   :  { %1490 = vrcp.f32 %v935_v47  ;;  %v947_v51 = vand.u32 2147483648, %v935_v47  ;;  %v945_v53 = vand.u32 2147483647, %v935_v47  ;;  %vm941_vm13 = vweird.f32 %v935_v47 }
0x118d   :  { %v948_v27 = vor.u32 1.1754944e-38, %v947_v51  ;;  %vm946_vm0 = vcmp.eq.f32.partialorder %v945_v53, 8.507059e+37 }
0x1191   :  { %v1491_v48 = vpop.eup %1490 }
0x1192   :  { %v937_v49 = vmul.f32 %v1491_v48, %v935_v47  ;;  %vm942_vm11 = vweird.f32 %v1491_v48 }
0x1193   :  { %vm943_vm15 = vmor %vm941_vm13, %vm942_vm11 }
0x1194   :  { %v938_v50 = vsub.f32 1.0, %v937_v49 }
0x1196   :  { %v939_v52 = vmul.f32 %v1491_v48, %v938_v50 }
0x1198   :  { %v940_v55 = vadd.f32 %v1491_v48, %v939_v52 }
0x119a   :  { %v944_v56 = vsel %vm943_vm15, %v1491_v48, %v940_v55 }
0x119b   :  { %v949_v58 = vsel %vm946_vm0, %v948_v27, %v944_v56 }
0x119c   :  { %v956_v59 = vmul.f32 %v954_v57, %v949_v58  ;;  %v963_v63 = vsub.f32 1.0, %v949_v58  ;;  %v969_v2 = vmul.f32 %v949_v58, %v1847_v25 }
0x119e   :  { %958 = vrot.lane.b32.xlu1 %v956_v59, %s1588_s5 }
0x1210   :  { %v959_v60 = vpop.permute.xlu1 %958 }
0x1211   :  { %v961_v61 = vadd.f32 %v959_v60, %v909_v42 }
0x1213   :  { %1492 = vtanh.f32 %v961_v61 }
0x1219   :  { %v1493_v62 = vpop.eup %1492 }
0x121a   :  { %965 = vrot.lane.b32.xlu2 %v1493_v62, %s1590_s13 }
0x1274   :  { %v966_v1 = vpop.permute.xlu2 %965 }
0x1275   :  { %v968_v3 = vmul.f32 %v966_v1, %v963_v63 }
0x1277   :  { %v970_v4 = vadd.f32 %v969_v2, %v968_v3 }
0x1279   :  { %972 = vrot.lane.b32.xlu0 %v970_v4, %s1590_s13 }
0x12eb   :  { %v973_v5 = vpop.permute.xlu0 %972 }
0x12ec   :  { %1420 = vmatmul.msk.f32.vlgmr.msra.gmra.mxu1 %vm214_vm6, %v973_v5  ;;  %1423 = vmatmul.msk.f32.vlgmr.msra.gmra.mxu0 %vm214_vm6, %v973_v5 }
0x12ed   :  { %1262 = vmatpush.msra.mxu1 %v1676_v7 }
0x12ef   :  { %1263 = vmatpush.msra.mxu1 %v1678_v8 }
0x12f1   :  { %1264 = vmatpush.msra.mxu1 %v1682_v9 }
0x12f3   :  { %1265 = vmatpush.msra.mxu1 %v1686_v10 }
0x1369   :  { %v993_v6 = vpop.f32.mrf.mxu1  ;;  %v1065_v11 = vpop.f32.mrf.mxu0 }
0x136a   :  { %v994_v12 = vadd.f32 %v1719_v20, %v993_v6  ;;  %v1088_v13 = vadd.f32 %v1065_v11, %v1663_v44 }
0x136c   :  { %vm996_vm1 = vcmp.ge.f32.partialorder %v994_v12, 0.0  ;;  %v997_v14 = vmul.f32 0.01, %v994_v12  ;;  %1090 = vrot.lane.b32.xlu1 %v1088_v13, %s1588_s5 }
0x136e   :  { %v998_v16 = vsel %vm996_vm1, %v994_v12, %v997_v14 }
0x136f   :  { %1421 = vmatmul.msk.f32.vlgmr.msra.gmra.mxu2 %vm312_vm12, %v998_v16 }
0x1370   :  { %1290 = vmatpush.msra.mxu2 %v1704_v17 }
0x1372   :  { %1291 = vmatpush.msra.mxu2 %v1709_v19 }
0x13de   :  { %v1091_v30 = vpop.permute.xlu1 %1090 }
0x13f2   :  { %v1019_v7 = vpop.f32.mrf.mxu2 }
0x13f3   :  { %v1020_v8 = vadd.f32 %v1739_v28, %v1019_v7 }
0x13f5   :  { %vm1022_vm2 = vcmp.ge.f32.partialorder %v1020_v8, 0.0  ;;  %v1023_v9 = vmul.f32 0.01, %v1020_v8 }
0x13f7   :  { %v1891_v10 = vsel %vm1022_vm2, %v1020_v8, %v1023_v9  ;;  %vm1323_vm2 = vcmask 195584  }
0x13f8   :  { %1422 = vmatmul.msk.f32.vlgmr.msra.gmra.mxu3 %vm339_vm14, %v1891_v10 }
0x147b   :  { %v1045_v18 = vpop.f32.mrf.mxu3 }
0x147c   :  { %v1046_v21 = vadd.f32 %v1751_v36, %v1045_v18 }
0x147e   :  { %v1068_v22 = vadd.f32 %v1065_v11, %v1046_v21 }
0x1480   :  { %v1424_v23 = vmul.f32 -1.442695, %v1068_v22 }
0x1482   :  { %1494 = vpow2.f32 %v1424_v23 }
0x1488   :  { %v1495_v24 = vpop.eup %1494 }
0x1489   :  { %v1072_v17 = vadd.f32 1.0, %v1495_v24 }
0x148b   :  { %1496 = vrcp.f32 %v1072_v17  ;;  %v1084_v32 = vand.u32 2147483648, %v1072_v17  ;;  %v1082_v34 = vand.u32 2147483647, %v1072_v17  ;;  %vm1078_vm4 = vweird.f32 %v1072_v17 }
0x148d   :  { %v1085_v29 = vor.u32 1.1754944e-38, %v1084_v32  ;;  %vm1083_vm7 = vcmp.eq.f32.partialorder %v1082_v34, 8.507059e+37  ;;  %v1338_v32 = vld [vmem:[#allocation5 + $0x140] sm:$0xff]  ;;  %v1336_v34 = vld [vmem:[#allocation5 + $0x130] sm:$0xff] }
0x1491   :  { %v1497_v19 = vpop.eup %1496 }
0x1492   :  { %v1074_v25 = vmul.f32 %v1497_v19, %v1072_v17  ;;  %vm1079_vm3 = vweird.f32 %v1497_v19 }
0x1493   :  { %vm1080_vm5 = vmor %vm1078_vm4, %vm1079_vm3  ;;  %vm1326_vm3 = vcmask 326656   ;;  %vm1328_vm4 = vcmask 392192  }
0x1494   :  { %v1075_v26 = vsub.f32 1.0, %v1074_v25 }
0x1496   :  { %v1076_v33 = vmul.f32 %v1497_v19, %v1075_v26  ;;  %v1339_v26 = vld [vmem:[#allocation5 + $0x148] sm:$0xff] }
0x1497   :  { %1356 = vmatpush.msra.mxu3 %v1339_v26 }
0x1498   :  { %v1077_v37 = vadd.f32 %v1497_v19, %v1076_v33  ;;  %v1337_v33 = vld [vmem:[#allocation5 + $0x138] sm:$0xff] }
0x1499   :  { %1357 = vmatpush.msra.mxu3 %v1338_v32 }
0x149a   :  { %v1081_v39 = vsel %vm1080_vm5, %v1497_v19, %v1077_v37  ;;  %v1334_v37 = vld [vmem:[#allocation5 + $0x120] sm:$0xff]  ;;  %vm1330_vm5 = vcmask 457728  }
0x149b   :  { %v1086_v31 = vsel %vm1083_vm7, %v1085_v29, %v1081_v39  ;;  %1358 = vmatpush.msra.mxu3 %v1337_v33  ;;  %v1333_v29 = vld [vmem:[#allocation5 + $0x118] sm:$0xff]  ;;  %vm1344_vm7 = vcmask 523264  }
0x149c   :  { %v1093_v38 = vmul.f32 %v1091_v30, %v1086_v31  ;;  %v1100_v45 = vsub.f32 1.0, %v1086_v31  ;;  %v1106_v47 = vmul.f32 %v1086_v31, %v970_v4 }
0x149d   :  { %1359 = vmatpush.msra.mxu3 %v1336_v34 }
0x149e   :  { %1095 = vrot.lane.b32.xlu2 %v1093_v38, %s1588_s5  ;;  %v1332_v38 = vld [vmem:[#allocation5 + $0x110] sm:$0xff] }
0x14f8   :  { %v1096_v41 = vpop.permute.xlu2 %1095 }
0x14f9   :  { %v1098_v42 = vadd.f32 %v1096_v41, %v1046_v21 }
0x14fb   :  { %1498 = vtanh.f32 %v1098_v42 }
0x1501   :  { %v1499_v43 = vpop.eup %1498 }
0x1502   :  { %1102 = vrot.lane.b32.xlu0 %v1499_v43, %s1590_s13 }
0x1574   :  { %v1103_v46 = vpop.permute.xlu0 %1102 }
0x1575   :  { %v1105_v48 = vmul.f32 %v1103_v46, %v1100_v45 }
0x1577   :  { %v1107_v49 = vadd.f32 %v1106_v47, %v1105_v48 }
0x1579   :  { %1109 = vrot.lane.b32.xlu1 %v1107_v49, %s1590_s13 }
0x15eb   :  { %v1110_v50 = vpop.permute.xlu1 %1109 }
0x15ec   :  { %1425 = vmatmul.msk.f32.vlgmr.msrb.gmra.mxu1 %vm214_vm6, %v1110_v50  ;;  %1428 = vmatmul.msk.f32.vlgmr.msrb.gmra.mxu0 %vm214_vm6, %v1110_v50 }
0x1669   :  { %v1130_v51 = vpop.f32.mrf.mxu1  ;;  %v1202_v52 = vpop.f32.mrf.mxu0 }
0x166a   :  { %v1131_v53 = vadd.f32 %v1719_v20, %v1130_v51  ;;  %v1225_v55 = vadd.f32 %v1202_v52, %v1663_v44 }
0x166c   :  { %vm1133_vm8 = vcmp.ge.f32.partialorder %v1131_v53, 0.0  ;;  %v1134_v27 = vmul.f32 0.01, %v1131_v53  ;;  %1227 = vrot.lane.b32.xlu2 %v1225_v55, %s1588_s5 }
0x166e   :  { %v1135_v56 = vsel %vm1133_vm8, %v1131_v53, %v1134_v27 }
0x166f   :  { %1426 = vmatmul.msk.f32.vlgmr.msrb.gmra.mxu2 %vm312_vm12, %v1135_v56 }
0x16f2   :  { %v1156_v57 = vpop.f32.mrf.mxu2 }
0x16f3   :  { %v1157_v58 = vadd.f32 %v1739_v28, %v1156_v57 }
0x16f5   :  { %vm1159_vm9 = vcmp.ge.f32.partialorder %v1157_v58, 0.0  ;;  %v1160_v59 = vmul.f32 0.01, %v1157_v58 }
0x16f7   :  { %v1161_v60 = vsel %vm1159_vm9, %v1157_v58, %v1160_v59 }
0x16f8   :  { %1427 = vmatmul.msk.f32.vlgmr.msrb.gmra.mxu3 %vm339_vm14, %v1161_v60 }
0x177b   :  { %v1182_v61 = vpop.f32.mrf.mxu3 }
0x177c   :  { %v1183_v62 = vadd.f32 %v1751_v36, %v1182_v61  ;;  %v1228_v36 = vpop.permute.xlu2 %1227 }
0x177e   :  { %v1205_v63 = vadd.f32 %v1202_v52, %v1183_v62 }
0x1780   :  { %v1429_v44 = vmul.f32 -1.442695, %v1205_v63 }
0x1782   :  { %1500 = vpow2.f32 %v1429_v44 }
0x1788   :  { %v1501_v1 = vpop.eup %1500 }
0x1789   :  { %v1209_v2 = vadd.f32 1.0, %v1501_v1 }
0x178b   :  { %1502 = vrcp.f32 %v1209_v2  ;;  %v1221_v6 = vand.u32 2147483648, %v1209_v2  ;;  %v1219_v12 = vand.u32 2147483647, %v1209_v2  ;;  %vm1215_vm11 = vweird.f32 %v1209_v2 }
0x178d   :  { %v1222_v14 = vor.u32 1.1754944e-38, %v1221_v6  ;;  %vm1220_vm15 = vcmp.eq.f32.partialorder %v1219_v12, 8.507059e+37 }
0x1791   :  { %v1503_v3 = vpop.eup %1502 }
0x1792   :  { %v1211_v4 = vmul.f32 %v1503_v3, %v1209_v2  ;;  %vm1216_vm10 = vweird.f32 %v1503_v3 }
0x1793   :  { %vm1217_vm13 = vmor %vm1215_vm11, %vm1216_vm10 }
0x1794   :  { %v1212_v5 = vsub.f32 1.0, %v1211_v4 }
0x1796   :  { %v1213_v11 = vmul.f32 %v1503_v3, %v1212_v5 }
0x1798   :  { %v1214_v13 = vadd.f32 %v1503_v3, %v1213_v11 }
0x179a   :  { %v1218_v16 = vsel %vm1217_vm13, %v1503_v3, %v1214_v13 }
0x179b   :  { %v1223_v7 = vsel %vm1220_vm15, %v1222_v14, %v1218_v16 }
0x179c   :  { %v1230_v8 = vmul.f32 %v1228_v36, %v1223_v7  ;;  %v1237_v22 = vsub.f32 1.0, %v1223_v7  ;;  %v1243_v24 = vmul.f32 %v1223_v7, %v1107_v49 }
0x179e   :  { %1232 = vrot.lane.b32.xlu0 %v1230_v8, %s1588_s5 }
0x17a6   :  { %1299 = vrot.lane.b32.xlu0 %v1778_v15, %s1587_s26 }
0x17ae   :  { %1308 = vrot.lane.b32.xlu0 %v1868_v40, %s1591_s14 }
0x1810   :  { %v1233_v9 = vpop.permute.xlu0 %1232 }
0x1811   :  { %v1235_v18 = vadd.f32 %v1233_v9, %v1183_v62 }
0x1813   :  { %1504 = vtanh.f32 %v1235_v18 }
0x1818   :  { %v1300_v41 = vpop.permute.xlu0 %1299 }
0x1819   :  { %v1505_v21 = vpop.eup %1504  ;;  %v1321_v45 = vsel %vm339_vm14, %v1742_v35, %v1300_v41  ;;  %v1457_v35 = vld [vmem:[%s1934_s2 + $0x9] ss:$0 sm:$0xff] }
0x181a   :  { %1239 = vrot.lane.b32.xlu1 %v1505_v21, %s1590_s13 }
0x1820   :  { %v1309_v46 = vpop.permute.xlu0 %1308 }
0x1822   :  { %1302 = vrot.lane.b32.xlu1 %v1808_v0, %s1592_s21 }
0x182a   :  { %1311 = vrot.lane.b32.xlu1 %v1891_v10, %s1593_s22 }
0x188c   :  { %v1240_v23 = vpop.permute.xlu1 %1239 }
0x188d   :  { %v1242_v17 = vmul.f32 %v1240_v23, %v1237_v22 }
0x188f   :  { %v1244_v15 = vadd.f32 %v1243_v24, %v1242_v17 }
0x1891   :  { %1246 = vrot.lane.b32.xlu2 %v1244_v15, %s1590_s13 }
0x1894   :  { %v1303_v43 = vpop.permute.xlu1 %1302 }
0x1895   :  { %v1322_v47 = vsel %vm312_vm12, %v1321_v45, %v1303_v43 }
0x1899   :  { %1305 = vrot.lane.b32.xlu2 %v1838_v54, %s1594_s23  ;;  %v1335_v54 = vld [vmem:[#allocation5 + $0x128] sm:$0xff] }
0x189a   :  { %1360 = vmatpush.msra.mxu3 %v1335_v54 }
0x189c   :  { %1361 = vmatpush.msra.mxu3 %v1334_v37  ;;  %v1312_v50 = vpop.permute.xlu1 %1311 }
0x189e   :  { %1362 = vmatpush.msra.mxu3 %v1333_v29 }
0x18a0   :  { %1363 = vmatpush.msra.mxu3 %v1332_v38 }
0x18a1   :  { %1314 = vrot.lane.b32.xlu2 %v1161_v60, %s1595_s24 }
0x18eb   :  { %v1247_v40 = vpop.permute.xlu2 %1246 }
0x18ec   :  { %1430 = vmatmul.msk.f32.vlgmr.msra.gmra.mxu1 %vm214_vm6, %v1247_v40 }
0x18f3   :  { %v1306_v42 = vpop.permute.xlu2 %1305 }
0x18f4   :  { %v1324_v48 = vsel %vm1323_vm2, %v1322_v47, %v1306_v42 }
0x18fb   :  { %v1315_v49 = vpop.permute.xlu2 %1314 }
0x1969   :  { %v1267_v19 = vpop.f32.mrf.mxu1 }
0x196a   :  { %v1268_v0 = vadd.f32 %v1719_v20, %v1267_v19 }
0x196c   :  { %vm1270_vm0 = vcmp.ge.f32.partialorder %v1268_v0, 0.0  ;;  %v1271_v10 = vmul.f32 0.01, %v1268_v0 }
0x196e   :  { %v1272_v25 = vsel %vm1270_vm0, %v1268_v0, %v1271_v10 }
0x196f   :  { %1431 = vmatmul.msk.f32.vlgmr.msra.gmra.mxu2 %vm312_vm12, %v1272_v25 }
0x19f2   :  { %v1293_v20 = vpop.f32.mrf.mxu2 }
0x19f3   :  { %v1294_v39 = vadd.f32 %v1739_v28, %v1293_v20  ;;  %v1325_v28 = vsel %vm214_vm6, %v1324_v48, %v1309_v46 }
0x19f4   :  { %v1327_v51 = vsel %vm1326_vm3, %v1325_v28, %v1312_v50 }
0x19f5   :  { %v1297_v30 = vmul.f32 0.01, %v1294_v39  ;;  %vm1296_vm1 = vcmp.ge.f32.partialorder %v1294_v39, 0.0  ;;  %v1329_v52 = vsel %vm1328_vm4, %v1327_v51, %v1315_v49 }
0x19f7   :  { %v1298_v31 = vsel %vm1296_vm1, %v1294_v39, %v1297_v30 }
0x19f8   :  { %1318 = vrot.lane.b32.xlu0 %v1298_v31, %s1596_s25 }
0x1a6a   :  { %v1319_v53 = vpop.permute.xlu0 %1318 }
0x1a6b   :  { %v1331_v55 = vsel %vm1330_vm5, %v1329_v52, %v1319_v53 }
0x1a6c   :  { %1432 = vmatmul.msk.f32.vlgmr.msra.gmra.mxu3 %vm1344_vm7, %v1331_v55 }
0x1aef   :  { %v1365_v27 = vpop.f32.mrf.mxu3 }
0x1af0   :  { %v1366_v56 = vadd.f32 %v1457_v35, %v1365_v27 }
0x1af2   :  { %1368 = vst [vmem:[#allocation7] sm:$0xff] %v1366_v56 }
0x1af3   :  { %1379 = dma.vmem_to_hbm [thread:$0]  %s1375_s27, 128, %s1377_s30, [#allocation4]  }
0x1af4   :  { %1582 = dma.done.wait [#allocation4], 128  }
0x1af5   :  { %1583 = vsyncadd [#allocation4], 4294967168 }
0x1af6   :  { %1384 = vsyncpa [#allocation3], 1 }
0x1af7   :  { %1385 = vsyncpa [#allocation6], 1 }
0x1af8   :  { %1386 = vsyncpa [#allocation4], 1 }

</bundles_post_ra>
